<compile_context>
chip_gen: v7x
topology: tpu7x:2x2x1
jax: 0.10.0
libtpu: 0.0.40
codegen_flags: <defaults>
</compile_context>

<pallas_src>
import math
import functools

import jax
import jax.numpy as jnp
from jax.experimental import pallas as pl
from jax.experimental.pallas import tpu as pltpu


def _round_up(x, m):
    return ((x + m - 1) // m) * m


# ----------------------------------------------------------------------------
# Fused tiled matmul: bias (+ residual) (+ ReLU) (+ LayerNorm) (+ chained
# second LayerNorm as a dual output).  bf16 operands, f32 accumulation.
# ----------------------------------------------------------------------------
def _mm_fused_kernel(*refs, has_res, has_ln1, has_ln2, act, n_valid, eps):
    it = iter(refs)
    a_ref = next(it)
    b_ref = next(it)
    bias_ref = next(it)
    res_ref = next(it) if has_res else None
    g1_ref = next(it) if has_ln1 else None
    b1_ref = next(it) if has_ln1 else None
    g2_ref = next(it) if has_ln2 else None
    b2_ref = next(it) if has_ln2 else None
    o1_ref = next(it)
    o2_ref = next(it) if has_ln2 else None
    acc_ref = next(it)

    @pl.when(pl.program_id(2) == 0)
    def _init():
        acc_ref[...] = jnp.zeros_like(acc_ref)

    acc_ref[...] += jnp.dot(a_ref[...], b_ref[...],
                            preferred_element_type=jnp.float32)

    @pl.when(pl.program_id(2) == pl.num_programs(2) - 1)
    def _finalize():
        y = acc_ref[...] + bias_ref[...]
        if has_res:
            y = y + res_ref[...].astype(jnp.float32)
        if act == "relu":
            y = jnp.maximum(y, 0.0)

        def _ln(z, g, bt):
            # LayerNorm over the (single) N tile.  Padded lanes of z are zero
            # and gamma/beta are zero-padded, so padded lanes stay zero and the
            # statistics use only the n_valid real channels.
            mean = jnp.sum(z, axis=-1, keepdims=True) * (1.0 / n_valid)
            lane = jax.lax.broadcasted_iota(jnp.int32, z.shape, 1)
            cen = jnp.where(lane < n_valid, z - mean, 0.0)
            var = jnp.sum(cen * cen, axis=-1, keepdims=True) * (1.0 / n_valid)
            return cen * jax.lax.rsqrt(var + eps) * g + bt

        if has_ln1:
            y = _ln(y, g1_ref[...], b1_ref[...])
        o1_ref[...] = y.astype(o1_ref.dtype)
        if has_ln2:
            o2_ref[...] = _ln(y, g2_ref[...], b2_ref[...]).astype(o2_ref.dtype)


def pallas_matmul(a, b, bias=None, residual=None, act=None, ln1=None, ln2=None,
                  out_dtype=jnp.bfloat16, out2_dtype=jnp.bfloat16):
    """a:(M,K) @ b:(K,N) + bias; optional fused residual/ReLU/LayerNorm(s).

    ln1: (gamma, beta) applied to the result (replaces the output).
    ln2: (gamma, beta) applied on top of the (possibly ln1'd) output, returned
         as a second array -> returns (out, ln2(out)).
    """
    M, K = a.shape
    K2, N = b.shape
    assert K == K2
    a = a.astype(jnp.bfloat16)
    b = b.astype(jnp.bfloat16)
    if bias is None:
        bias = jnp.zeros((N,), jnp.float32)
    bias2 = bias.astype(jnp.float32).reshape(1, N)

    has_ln = (ln1 is not None) or (ln2 is not None)
    TM = min(_round_up(M, 8), 512)
    TK = min(_round_up(K, 128), 512)
    if has_ln:
        # LayerNorm needs the whole channel row in one tile (true for all
        # SegFormer widths here: N <= 128 after padding).
        TN = _round_up(N, 128)
    else:
        TN = min(_round_up(N, 128), 256)
    Mp, Np, Kp = _round_up(M, TM), _round_up(N, TN), _round_up(K, TK)
    if has_ln:
        assert Np == TN, "fused LayerNorm requires a single N tile"

    a = jnp.pad(a, ((0, Mp - M), (0, Kp - K)))
    b = jnp.pad(b, ((0, Kp - K), (0, Np - N)))
    bias2 = jnp.pad(bias2, ((0, 0), (0, Np - N)))

    args = [a, b, bias2]
    in_specs = [
        pl.BlockSpec((TM, TK), lambda i, j, k: (i, k)),
        pl.BlockSpec((TK, TN), lambda i, j, k: (k, j)),
        pl.BlockSpec((1, TN), lambda i, j, k: (0, j)),
    ]
    if residual is not None:
        r = jnp.pad(residual.astype(jnp.bfloat16), ((0, Mp - M), (0, Np - N)))
        args.append(r)
        in_specs.append(pl.BlockSpec((TM, TN), lambda i, j, k: (i, j)))

    def _ln_params(ln):
        g, bt = ln
        g2 = jnp.pad(g.astype(jnp.float32).reshape(1, N), ((0, 0), (0, Np - N)))
        bt2 = jnp.pad(bt.astype(jnp.float32).reshape(1, N), ((0, 0), (0, Np - N)))
        return g2, bt2

    for ln in (ln1, ln2):
        if ln is not None:
            g2, bt2 = _ln_params(ln)
            args += [g2, bt2]
            in_specs += [pl.BlockSpec((1, TN), lambda i, j, k: (0, j))] * 2

    out_shapes = [jax.ShapeDtypeStruct((Mp, Np), out_dtype)]
    out_specs = [pl.BlockSpec((TM, TN), lambda i, j, k: (i, j))]
    if ln2 is not None:
        out_shapes.append(jax.ShapeDtypeStruct((Mp, Np), out2_dtype))
        out_specs.append(pl.BlockSpec((TM, TN), lambda i, j, k: (i, j)))

    kernel = functools.partial(
        _mm_fused_kernel,
        has_res=residual is not None,
        has_ln1=ln1 is not None,
        has_ln2=ln2 is not None,
        act=act, n_valid=N, eps=1e-5)

    res = pl.pallas_call(
        kernel,
        out_shape=tuple(out_shapes) if len(out_shapes) > 1 else out_shapes[0],
        grid=(Mp // TM, Np // TN, Kp // TK),
        in_specs=in_specs,
        out_specs=tuple(out_specs) if len(out_specs) > 1 else out_specs[0],
        scratch_shapes=[pltpu.VMEM((TM, TN), jnp.float32)],
        compiler_params=pltpu.CompilerParams(
            dimension_semantics=("parallel", "parallel", "arbitrary")),
    )(*args)

    if ln2 is not None:
        o1, o2 = res
        return o1[:M, :N], o2[:M, :N]
    return res[:M, :N]


# ----------------------------------------------------------------------------
# Attention: one grid step per (batch*head, Lq tile); bf16 q/k/v, f32 scores,
# p cast back to bf16 for the PV matmul.
# ----------------------------------------------------------------------------
def _attn_kernel(q_ref, k_ref, v_ref, o_ref, *, scale):
    q = q_ref[0]                               # (TLQ, hd) bf16
    k = k_ref[0]                               # (Lk, hd) bf16
    v = v_ref[0]                               # (Lk, hd) bf16
    s = jax.lax.dot_general(q, k, (((1,), (1,)), ((), ())),
                            preferred_element_type=jnp.float32) * scale
    s = s - jnp.max(s, axis=-1, keepdims=True)
    p = jnp.exp(s)
    inv = pl.reciprocal(jnp.sum(p, axis=-1, keepdims=True), approx=True)
    o = jnp.dot(p.astype(v.dtype), v, preferred_element_type=jnp.float32) * inv
    o_ref[0] = o.astype(o_ref.dtype)


def pallas_attention(q, k, v, num_heads):
    """q:(B,Lq,C), k/v:(B,Lk,C) bf16 -> (B,Lq,C) bf16."""
    # TODO(synk): for very long reduced sequences, switch the Lq tiling to a
    # true online-softmax over Lk tiles (flash-style); here Lk fits one block.
    B, Lq, C = q.shape
    _, Lk, _ = k.shape
    hd = C // num_heads
    scale = 1.0 / math.sqrt(hd)

    def _split(x, L):
        return (x.reshape(B, L, num_heads, hd)
                 .transpose(0, 2, 1, 3)
                 .reshape(B * num_heads, L, hd))

    qh, kh, vh = _split(q, Lq), _split(k, Lk), _split(v, Lk)

    TLQ = Lq if Lq <= 512 else 256
    Lqp = _round_up(Lq, TLQ)
    if Lqp != Lq:
        qh = jnp.pad(qh, ((0, 0), (0, Lqp - Lq), (0, 0)))

    o = pl.pallas_call(
        functools.partial(_attn_kernel, scale=scale),
        out_shape=jax.ShapeDtypeStruct((B * num_heads, Lqp, hd), jnp.bfloat16),
        grid=(B * num_heads, Lqp // TLQ),
        in_specs=[
            pl.BlockSpec((1, TLQ, hd), lambda b, i: (b, i, 0)),
            pl.BlockSpec((1, Lk, hd), lambda b, i: (b, 0, 0)),
            pl.BlockSpec((1, Lk, hd), lambda b, i: (b, 0, 0)),
        ],
        out_specs=pl.BlockSpec((1, TLQ, hd), lambda b, i: (b, i, 0)),
        compiler_params=pltpu.CompilerParams(
            dimension_semantics=("parallel", "parallel")),
    )(qh, kh, vh)

    o = o[:, :Lq, :]
    return (o.reshape(B, num_heads, Lq, hd)
             .transpose(0, 2, 1, 3)
             .reshape(B, Lq, C))


# ----------------------------------------------------------------------------
# Depthwise/grouped 3x3 conv: (9, R, C) bf16 taps, expansion folded in-kernel.
# Output channel order is j*C + c (j = within-group index); the consumer's
# weights are permuted accordingly (zero runtime cost).
# ----------------------------------------------------------------------------
def _dwconv_kernel(taps_ref, w_ref, b_ref, o_ref, *, expansion):
    TR = o_ref.shape[0]
    C = taps_ref.shape[-1]
    w = w_ref[...]                                     # (exp, 9, C) f32, tiny
    accs = [jnp.zeros((TR, C), jnp.float32) for _ in range(expansion)]
    for t in range(9):                                 # unrolled VPU FMAs
        tap = taps_ref[t].astype(jnp.float32)
        for j in range(expansion):
            accs[j] = accs[j] + tap * w[j, t:t + 1, :]
    y = accs[0] if expansion == 1 else jnp.concatenate(accs, axis=-1)
    o_ref[...] = (y + b_ref[...]).astype(o_ref.dtype)


def pallas_dwconv3x3(taps, w_lay, b_lay, expansion):
    """taps:(9,R,C) bf16, w_lay:(exp,9,C) f32, b_lay:(1,exp*C) f32 -> (R,exp*C) bf16."""
    _, R, C = taps.shape
    Ce = expansion * C
    TR = min(_round_up(R, 8), 1024)
    Rp = _round_up(R, TR)
    taps = jnp.pad(taps, ((0, 0), (0, Rp - R), (0, 0)))
    y = pl.pallas_call(
        functools.partial(_dwconv_kernel, expansion=expansion),
        out_shape=jax.ShapeDtypeStruct((Rp, Ce), jnp.bfloat16),
        grid=(Rp // TR,),
        in_specs=[
            pl.BlockSpec((9, TR, C), lambda i: (0, i, 0)),
            pl.BlockSpec((expansion, 9, C), lambda i: (0, 0, 0)),
            pl.BlockSpec((1, Ce), lambda i: (0, 0)),
        ],
        out_specs=pl.BlockSpec((TR, Ce), lambda i: (i, 0)),
        compiler_params=pltpu.CompilerParams(
            dimension_semantics=("parallel",)),
    )(taps, w_lay, b_lay)
    return y[:R]


def depthwise_expand_conv3x3(x_nhwc, w, b):
    """Conv2d(C, C*exp, 3, groups=C, padding=1).  Returns (R, exp*C) bf16 with
    output-channel order j*C + c (consumer weights are permuted to match)."""
    # TODO(synk): generating the 9 taps from a halo-padded spatial block inside
    # the kernel would avoid even this (bf16) 9x slab materialization.
    B, H, W, C = x_nhwc.shape
    exp = w.shape[0] // C
    xp = jnp.pad(x_nhwc.astype(jnp.bfloat16), ((0, 0), (1, 1), (1, 1), (0, 0)))
    taps = jnp.stack(
        [xp[:, dy:dy + H, dx:dx + W, :].reshape(B * H * W, C)
         for dy in range(3) for dx in range(3)], axis=0)          # (9, R, C)
    # w[(c*exp+j), 0, dy, dx] -> w_lay[j, t, c]
    w_lay = jnp.transpose(w.reshape(C, exp, 9), (1, 2, 0)).astype(jnp.float32)
    b_lay = jnp.transpose(b.reshape(C, exp), (1, 0)).reshape(1, exp * C)
    b_lay = b_lay.astype(jnp.float32)
    return pallas_dwconv3x3(taps, w_lay, b_lay, exp)


# ----------------------------------------------------------------------------
# Glue (im2col, bilinear upsample) in plain JAX
# ----------------------------------------------------------------------------
def _im2col(x_nhwc, k, stride, pad):
    # TODO(synk): im2col still materializes a k^2-inflated slab (now bf16);
    # shifted BlockSpec halo reads feeding the matmul would avoid it entirely.
    B, H, W, C = x_nhwc.shape
    xp = jnp.pad(x_nhwc, ((0, 0), (pad, pad), (pad, pad), (0, 0)))
    Ho = (H + 2 * pad - k) // stride + 1
    Wo = (W + 2 * pad - k) // stride + 1
    cols = []
    for dy in range(k):
        for dx in range(k):
            patch = xp[:, dy:dy + stride * (Ho - 1) + 1:stride,
                          dx:dx + stride * (Wo - 1) + 1:stride, :]
            cols.append(patch)                       # (B, Ho, Wo, C)
    cols = jnp.stack(cols, axis=3)                   # (B, Ho, Wo, k*k, C)
    cols = jnp.transpose(cols, (0, 1, 2, 4, 3))      # (B, Ho, Wo, C, k*k)
    return cols.reshape(B * Ho * Wo, C * k * k), Ho, Wo


def conv_kxk(x_nhwc, w, b, stride, pad, ln1=None, ln2=None):
    """Dense conv via bf16 im2col + fused Pallas matmul.  w: (Cout,Cin,k,k)."""
    B = x_nhwc.shape[0]
    Cout, Cin, k, _ = w.shape
    cols, Ho, Wo = _im2col(x_nhwc.astype(jnp.bfloat16), k, stride, pad)
    res = pallas_matmul(cols, w.reshape(Cout, -1).T, b, ln1=ln1, ln2=ln2)
    if ln2 is not None:
        o1, o2 = res
        return o1.reshape(B, Ho, Wo, Cout), o2.reshape(B, Ho, Wo, Cout)
    return res.reshape(B, Ho, Wo, Cout)


def upsample_bilinear_ac(x_nhwc, scale):
    """nn.UpsamplingBilinear2d(scale_factor=scale): bilinear, align_corners=True."""
    # TODO(synk): irregular gather -- kept in plain JAX (no clean Pallas tile map).
    B, H, W, C = x_nhwc.shape
    Ho, Wo = H * scale, W * scale

    def coords(n_in, n_out):
        if n_in == 1 or n_out == 1:
            src = jnp.zeros((n_out,), jnp.float32)
        else:
            src = jnp.arange(n_out, dtype=jnp.float32) * ((n_in - 1) / (n_out - 1))
        i0 = jnp.clip(jnp.floor(src).astype(jnp.int32), 0, n_in - 1)
        i1 = jnp.clip(i0 + 1, 0, n_in - 1)
        wgt = src - i0.astype(jnp.float32)
        return i0, i1, wgt

    y0, y1, wy = coords(H, Ho)
    x0, x1, wx = coords(W, Wo)
    r0 = jnp.take(x_nhwc, y0, axis=1)
    r1 = jnp.take(x_nhwc, y1, axis=1)
    xr = r0 * (1.0 - wy)[None, :, None, None] + r1 * wy[None, :, None, None]
    c0 = jnp.take(xr, x0, axis=2)
    c1 = jnp.take(xr, x1, axis=2)
    return c0 * (1.0 - wx)[None, None, :, None] + c1 * wx[None, None, :, None]


# ----------------------------------------------------------------------------
# SegFormer forward
# ----------------------------------------------------------------------------
def efficient_mha_fused(y1_nhwc, x_res_2d, p, num_heads, rr, ln2_g, ln2_b):
    """y1 = LN1(x) in NHWC, x_res_2d = residual stream (R,C) bf16.
    Returns (x2, y2) = (x + attn(y1), LN2(x2)), both (R, C) bf16."""
    B, H, W, C = y1_nhwc.shape
    # reducer: Conv2d(C, C, k=rr, stride=rr) with LayerNorm2d fused in epilogue
    red = conv_kxk(y1_nhwc, p["red_w"], p["red_b"], stride=rr, pad=0,
                   ln1=(p["red_ln_g"], p["red_ln_b"]))
    Hr, Wr = red.shape[1], red.shape[2]
    Lq, Lk = H * W, Hr * Wr

    xq = y1_nhwc.reshape(B * Lq, C)
    kv = red.reshape(B * Lk, C)
    Wq, Wkv = p["in_w"][:C], p["in_w"][C:]
    bq, bkv = p["in_b"][:C], p["in_b"][C:]
    q = pallas_matmul(xq, Wq.T, bq)                       # (B*Lq, C) bf16
    kvp = pallas_matmul(kv, Wkv.T, bkv)                   # (B*Lk, 2C) bf16
    k = kvp[:, :C].reshape(B, Lk, C)
    v = kvp[:, C:].reshape(B, Lk, C)

    o = pallas_attention(q.reshape(B, Lq, C), k, v, num_heads)   # (B, Lq, C)
    # out-projection with fused residual add and LN2 (dual output)
    x2, y2 = pallas_matmul(o.reshape(B * Lq, C), p["out_w"].T, p["out_b"],
                           residual=x_res_2d, ln2=(ln2_g, ln2_b))
    return x2, y2


def encoder_block(x2d, y1_2d, bhwc, p, num_heads, rr, next_g, next_b, is_last):
    B, H, W, C = bhwc
    # ResidualAdd(LayerNorm2d -> EfficientMultiHeadAttention): ln1 came in as
    # y1_2d (fused into the previous producer); residual + ln2 fused here.
    x2, y2 = efficient_mha_fused(y1_2d.reshape(B, H, W, C), x2d, p["attn"],
                                 num_heads, rr, p["ln2_g"], p["ln2_b"])
    # MixMLP: 1x1 conv -> grouped 3x3 (expansion) -> GELU -> 1x1 conv
    m = pallas_matmul(y2, p["mlp_w1"].reshape(C, C).T, p["mlp_b1"])
    d = depthwise_expand_conv3x3(m.reshape(B, H, W, C),
                                 p["mlp_dw_w"], p["mlp_dw_b"])
    # TODO(synk): exact-erf GELU kept in XLA (erf not fused into the Pallas
    # epilogue); it is a single elementwise pass over a bf16 slab.
    d = jax.nn.gelu(d.astype(jnp.float32), approximate=False).astype(jnp.bfloat16)
    exp = p["mlp_dw_w"].shape[0] // C
    # permute w3's input-channel axis to match the dwconv's (j, c) output order
    w3 = p["mlp_w3"].reshape(C, C * exp)
    w3_lay = jnp.transpose(w3.reshape(C, C, exp), (0, 2, 1)).reshape(C, C * exp)
    if is_last:
        # residual + the stage norm fused; pre-norm stream not needed anymore
        y_out = pallas_matmul(d, w3_lay.T, p["mlp_b3"], residual=x2,
                              ln1=(next_g, next_b))
        return None, y_out
    x3, y_next = pallas_matmul(d, w3_lay.T, p["mlp_b3"], residual=x2,
                               ln2=(next_g, next_b))
    return x3, y_next


def encoder_stage(x_nhwc, p, patch_size, overlap_size, rr, num_heads):
    # NOTE: the reference LayerNorm2d computes an unused `overlap_size` scalar;
    # it is a no-op and ignored here.
    blocks = p["blocks"]
    # OverlapPatchMerging conv with its LayerNorm fused, plus the first block's
    # ln1 chained as a dual output.
    x, y1 = conv_kxk(x_nhwc, p["pm_w"], None, stride=overlap_size,
                     pad=patch_size // 2,
                     ln1=(p["pm_ln_g"], p["pm_ln_b"]),
                     ln2=(blocks[0]["ln1_g"], blocks[0]["ln1_b"]))
    B, H, W, C = x.shape
    x2d = x.reshape(B * H * W, C)
    y1_2d = y1.reshape(B * H * W, C)
    for bi, bp in enumerate(blocks):
        is_last = bi == len(blocks) - 1
        if is_last:
            ng, nb = p["norm_g"], p["norm_b"]          # stage norm
        else:
            ng, nb = blocks[bi + 1]["ln1_g"], blocks[bi + 1]["ln1_b"]
        x2d, y1_2d = encoder_block(x2d, y1_2d, (B, H, W, C), bp,
                                   num_heads, rr, ng, nb, is_last)
    return y1_2d.reshape(B, H, W, C)


def segformer_forward(params, cfg, x_nchw):
    x = jnp.transpose(x_nchw, (0, 2, 3, 1)).astype(jnp.bfloat16)   # NCHW->NHWC
    # Encoder
    features = []
    for sp, ps, ov, rr, nh in zip(params["encoder"], cfg["patch_sizes"],
                                  cfg["overlap_sizes"], cfg["reduction_ratios"],
                                  cfg["all_num_heads"]):
        x = encoder_stage(x, sp, ps, ov, rr, nh)
        features.append(x)

    # Decoder: 1x1 conv BEFORE the bilinear upsample (they commute; the matmul
    # then runs on scale^2 fewer rows).
    dch = cfg["decoder_channels"]
    ups = []
    for feat, dp, sf in zip(features[::-1], params["decoder"], cfg["scale_factors"]):
        B, H, W, C = feat.shape
        y = pallas_matmul(feat.reshape(B * H * W, C),
                          dp["w"].reshape(dch, C).T, dp["b"])
        ups.append(upsample_bilinear_ac(y.reshape(B, H, W, dch), sf))

    # Head: concat -> 1x1 conv (no bias) + ReLU (fused) -> BatchNorm2d affine
    # folded into the prediction conv -> 1x1 conv.
    h = jnp.concatenate(ups, axis=-1)
    Bh, Hh, Wh, Ct = h.shape
    fuse_w = params["head"]["fuse_w"].reshape(dch, Ct)
    r = pallas_matmul(h.reshape(Bh * Hh * Wh, Ct), fuse_w.T, None, act="relu")
    # TODO(synk): BatchNorm2d reproduced in eval mode with fresh running stats
    # (mean=0, var=1), folded into the prediction conv's weights/bias.
    scale = params["head"]["bn_g"] / jnp.sqrt(1.0 + 1e-5)
    shift = params["head"]["bn_b"]
    ncls = cfg["num_classes"]
    pw = params["head"]["pred_w"].reshape(ncls, dch)
    pw_eff = pw * scale[None, :]
    pb_eff = params["head"]["pred_b"] + pw @ shift
    out = pallas_matmul(r, pw_eff.T, pb_eff, out_dtype=jnp.float32)
    out = out.reshape(Bh, Hh, Wh, ncls)
    return jnp.transpose(out, (0, 3, 1, 2))           # NHWC -> NCHW


# ----------------------------------------------------------------------------
# Deterministic parameter init (PyTorch-style shapes)
# ----------------------------------------------------------------------------
def _build_params(key, cfg):
    keys = iter(jax.random.split(key, 256))

    def nk():
        return next(keys)

    def uni(k, shape, bound):
        return jax.random.uniform(k, shape, jnp.float32, -bound, bound)

    def conv_init(k, cout, cin_g, ksize):
        k1, k2 = jax.random.split(k)
        bound = 1.0 / math.sqrt(cin_g * ksize * ksize)
        w = uni(k1, (cout, cin_g, ksize, ksize), bound)
        b = uni(k2, (cout,), bound)
        return w, b

    ones = lambda n: jnp.ones((n,), jnp.float32)
    zeros = lambda n: jnp.zeros((n,), jnp.float32)

    enc = []
    cin = cfg["in_channels"]
    for width, depth, nh, ps, ov, rr, exp in zip(
            cfg["widths"], cfg["depths"], cfg["all_num_heads"], cfg["patch_sizes"],
            cfg["overlap_sizes"], cfg["reduction_ratios"], cfg["mlp_expansions"]):
        pm_w, _ = conv_init(nk(), width, cin, ps)  # OverlapPatchMerging conv has no bias
        stage = {"pm_w": pm_w, "pm_ln_g": ones(width), "pm_ln_b": zeros(width),
                 "blocks": [], "norm_g": ones(width), "norm_b": zeros(width)}
        for _ in range(depth):
            red_w, red_b = conv_init(nk(), width, width, rr)
            in_w = uni(nk(), (3 * width, width), math.sqrt(6.0 / (4 * width)))
            out_w = uni(nk(), (width, width), 1.0 / math.sqrt(width))
            w1, b1 = conv_init(nk(), width, width, 1)
            dw_w, dw_b = conv_init(nk(), width * exp, 1, 3)
            w3, b3 = conv_init(nk(), width, width * exp, 1)
            stage["blocks"].append({
                "ln1_g": ones(width), "ln1_b": zeros(width),
                "attn": {"red_w": red_w, "red_b": red_b,
                         "red_ln_g": ones(width), "red_ln_b": zeros(width),
                         "in_w": in_w, "in_b": zeros(3 * width),
                         "out_w": out_w, "out_b": zeros(width)},
                "ln2_g": ones(width), "ln2_b": zeros(width),
                "mlp_w1": w1, "mlp_b1": b1,
                "mlp_dw_w": dw_w, "mlp_dw_b": dw_b,
                "mlp_w3": w3, "mlp_b3": b3,
            })
        enc.append(stage)
        cin = width

    dec = []
    for width in cfg["widths"][::-1]:
        w, b = conv_init(nk(), cfg["decoder_channels"], width, 1)
        dec.append({"w": w, "b": b})

    dch = cfg["decoder_channels"]
    fuse_w, _ = conv_init(nk(), dch, dch * len(cfg["widths"]), 1)
    pred_w, pred_b = conv_init(nk(), cfg["num_classes"], dch, 1)
    head = {"fuse_w": fuse_w, "bn_g": ones(dch), "bn_b": zeros(dch),
            "pred_w": pred_w, "pred_b": pred_b}

    return {"encoder": enc, "decoder": dec, "head": head}


# ----------------------------------------------------------------------------
if __name__ == "__main__":
    cfg = dict(
        in_channels=3,
        widths=[8, 16, 32, 64],
        depths=[1, 1, 1, 1],
        all_num_heads=[1, 2, 4, 8],
        patch_sizes=[7, 3, 3, 3],
        overlap_sizes=[4, 2, 2, 2],
        reduction_ratios=[8, 4, 2, 1],
        mlp_expansions=[2, 2, 2, 2],
        decoder_channels=16,
        scale_factors=[8, 4, 2, 1],
        num_classes=4,
        drop_prob=0.0,   # StochasticDepth(p=0) == identity
    )

    root = jax.random.PRNGKey(0)
    pkey, xkey = jax.random.split(root)
    params = _build_params(pkey, cfg)

    x = jax.random.normal(xkey, (2, 3, 32, 32), jnp.float32)  # NCHW like PyTorch

    out = segformer_forward(params, cfg, x)
    out = jax.block_until_ready(out)
    assert out.shape == (2, cfg["num_classes"], 8, 8), out.shape
    assert bool(jnp.all(jnp.isfinite(out)))
    print("KERNEL_OK")
</pallas_src>

<mosaic_0001>
module attributes {stable_mosaic.version = 11 : i64} {
  func.func @_mm_fused_kernel(%arg0: i32, %arg1: i32, %arg2: i32, %arg3: memref<128x256xbf16, #tpu.memory_space<vmem>>, %arg4: memref<256x128xbf16, #tpu.memory_space<vmem>>, %arg5: memref<1x128xf32, #tpu.memory_space<vmem>>, %arg6: memref<1x128xf32, #tpu.memory_space<vmem>>, %arg7: memref<1x128xf32, #tpu.memory_space<vmem>>, %arg8: memref<1x128xf32, #tpu.memory_space<vmem>>, %arg9: memref<1x128xf32, #tpu.memory_space<vmem>>, %arg10: memref<128x128xbf16, #tpu.memory_space<vmem>>, %arg11: memref<128x128xbf16, #tpu.memory_space<vmem>>, %arg12: memref<128x128xf32, #tpu.memory_space<vmem>>) attributes {dimension_semantics = [#tpu.dimension_semantics<parallel>, #tpu.dimension_semantics<parallel>, #tpu.dimension_semantics<arbitrary>], iteration_bounds = array<i64: 1, 1, 1>, scalar_prefetch = 0 : i64, scratch_operands = 1 : i64, tpu.core_type = #tpu.core_type<tc>, window_params = [{transform_indices = @transform_0, window_bounds = array<i64: 128, 256>}, {transform_indices = @transform_1, window_bounds = array<i64: 256, 128>}, {transform_indices = @transform_2, window_bounds = array<i64: 1, 128>}, {transform_indices = @transform_3, window_bounds = array<i64: 1, 128>}, {transform_indices = @transform_4, window_bounds = array<i64: 1, 128>}, {transform_indices = @transform_5, window_bounds = array<i64: 1, 128>}, {transform_indices = @transform_6, window_bounds = array<i64: 1, 128>}, {transform_indices = @transform_7, window_bounds = array<i64: 128, 128>}, {transform_indices = @transform_8, window_bounds = array<i64: 128, 128>}]} {
    %c0_i32 = arith.constant 0 : i32
    %0 = arith.cmpi eq, %arg2, %c0_i32 : i32
    %1 = arith.extui %0 : i1 to i32
    %c0_i32_0 = arith.constant 0 : i32
    %2 = arith.cmpi ne, %1, %c0_i32_0 : i32
    scf.if %2 {
      %cst_10 = arith.constant 0.000000e+00 : f32
      %12 = vector.broadcast %cst_10 : f32 to vector<128x128xf32>
      %c0_11 = arith.constant 0 : index
      %c0_12 = arith.constant 0 : index
      %13 = vector.load %arg12[%c0_11, %c0_12] : memref<128x128xf32, #tpu.memory_space<vmem>>, vector<128x128xf32>
      tpu.vector_store %arg12[%c0_11, %c0_12], %12 {strides = array<i32>} : memref<128x128xf32, #tpu.memory_space<vmem>>, vector<128x128xf32>,
    } else {
    }
    %c0 = arith.constant 0 : index
    %c0_1 = arith.constant 0 : index
    %3 = vector.load %arg12[%c0, %c0_1] : memref<128x128xf32, #tpu.memory_space<vmem>>, vector<128x128xf32>
    %c0_2 = arith.constant 0 : index
    %c0_3 = arith.constant 0 : index
    %4 = vector.load %arg3[%c0_2, %c0_3] : memref<128x256xbf16, #tpu.memory_space<vmem>>, vector<128x256xbf16>
    %c0_4 = arith.constant 0 : index
    %c0_5 = arith.constant 0 : index
    %5 = vector.load %arg4[%c0_4, %c0_5] : memref<256x128xbf16, #tpu.memory_space<vmem>>, vector<256x128xbf16>
    %cst = arith.constant dense<0.000000e+00> : vector<128x128xf32>
    %6 = tpu.matmul %4, %5, %cst {dimension_numbers = #tpu.dot_dimension_numbers<[1], [0], [0], [1], [0, 0, 1, 1], [], []>} : vector<128x256xbf16>, vector<256x128xbf16>, vector<128x128xf32> -> vector<128x128xf32>
    %7 = arith.addf %3, %6 : vector<128x128xf32>
    %c0_6 = arith.constant 0 : index
    %c0_7 = arith.constant 0 : index
    %8 = vector.load %arg12[%c0_6, %c0_7] : memref<128x128xf32, #tpu.memory_space<vmem>>, vector<128x128xf32>
    tpu.vector_store %arg12[%c0_6, %c0_7], %7 {strides = array<i32>} : memref<128x128xf32, #tpu.memory_space<vmem>>, vector<128x128xf32>,
    %c0_i32_8 = arith.constant 0 : i32
    %9 = arith.cmpi eq, %arg2, %c0_i32_8 : i32
    %10 = arith.extui %9 : i1 to i32
    %c0_i32_9 = arith.constant 0 : i32
    %11 = arith.cmpi ne, %10, %c0_i32_9 : i32
    scf.if %11 {
      %c0_10 = arith.constant 0 : index
      %c0_11 = arith.constant 0 : index
      %12 = vector.load %arg12[%c0_10, %c0_11] : memref<128x128xf32, #tpu.memory_space<vmem>>, vector<128x128xf32>
      %c0_12 = arith.constant 0 : index
      %c0_13 = arith.constant 0 : index
      %13 = vector.load %arg5[%c0_12, %c0_13] : memref<1x128xf32, #tpu.memory_space<vmem>>, vector<1x128xf32>
      %14 = vector.broadcast %13 : vector<1x128xf32> to vector<128x128xf32>
      %15 = arith.addf %12, %14 : vector<128x128xf32>
      %c0_14 = arith.constant 0 : index
      %c0_15 = arith.constant 0 : index
      %16 = vector.load %arg6[%c0_14, %c0_15] : memref<1x128xf32, #tpu.memory_space<vmem>>, vector<1x128xf32>
      %c0_16 = arith.constant 0 : index
      %c0_17 = arith.constant 0 : index
      %17 = vector.load %arg7[%c0_16, %c0_17] : memref<1x128xf32, #tpu.memory_space<vmem>>, vector<1x128xf32>
      %cst_18 = arith.constant dense<0.000000e+00> : vector<128xf32>
      %18 = vector.multi_reduction <add>, %15, %cst_18 [1] : vector<128x128xf32> to vector<128xf32>
      %19 = vector.shape_cast %18 : vector<128xf32> to vector<128x1xf32>
      %cst_19 = arith.constant 1.250000e-01 : f32
      %20 = vector.broadcast %cst_19 : f32 to vector<128x1xf32>
      %21 = arith.mulf %19, %20 : vector<128x1xf32>
      %22 = tpu.iota {dimensions = array<i32: 1>} : vector<128x128xi32>
      %c8_i32 = arith.constant 8 : i32
      %23 = vector.broadcast %c8_i32 : i32 to vector<128x128xi32>
      %24 = arith.cmpi slt, %22, %23 : vector<128x128xi32>
      %25 = vector.broadcast %21 : vector<128x1xf32> to vector<128x128xf32>
      %26 = arith.subf %15, %25 : vector<128x128xf32>
      %cst_20 = arith.constant 0.000000e+00 : f32
      %27 = vector.broadcast %cst_20 : f32 to vector<128x128xf32>
      %28 = arith.select %24, %26, %27 : vector<128x128xi1>, vector<128x128xf32>
      %29 = arith.mulf %28, %28 : vector<128x128xf32>
      %cst_21 = arith.constant dense<0.000000e+00> : vector<128xf32>
      %30 = vector.multi_reduction <add>, %29, %cst_21 [1] : vector<128x128xf32> to vector<128xf32>
      %31 = vector.shape_cast %30 : vector<128xf32> to vector<128x1xf32>
      %cst_22 = arith.constant 1.250000e-01 : f32
      %32 = vector.broadcast %cst_22 : f32 to vector<128x1xf32>
      %33 = arith.mulf %31, %32 : vector<128x1xf32>
      %cst_23 = arith.constant 9.99999974E-6 : f32
      %34 = vector.broadcast %cst_23 : f32 to vector<128x1xf32>
      %35 = arith.addf %33, %34 : vector<128x1xf32>
      %36 = math.rsqrt %35 : vector<128x1xf32>
      %37 = vector.broadcast %36 : vector<128x1xf32> to vector<128x128xf32>
      %38 = arith.mulf %28, %37 : vector<128x128xf32>
      %39 = vector.broadcast %16 : vector<1x128xf32> to vector<128x128xf32>
      %40 = arith.mulf %38, %39 : vector<128x128xf32>
      %41 = vector.broadcast %17 : vector<1x128xf32> to vector<128x128xf32>
      %42 = arith.addf %40, %41 : vector<128x128xf32>
      %43 = arith.truncf %42 : vector<128x128xf32> to vector<128x128xbf16>
      %c0_24 = arith.constant 0 : index
      %c0_25 = arith.constant 0 : index
      %44 = vector.load %arg10[%c0_24, %c0_25] : memref<128x128xbf16, #tpu.memory_space<vmem>>, vector<128x128xbf16>
      tpu.vector_store %arg10[%c0_24, %c0_25], %43 {strides = array<i32>} : memref<128x128xbf16, #tpu.memory_space<vmem>>, vector<128x128xbf16>,
      %c0_26 = arith.constant 0 : index
      %c0_27 = arith.constant 0 : index
      %45 = vector.load %arg8[%c0_26, %c0_27] : memref<1x128xf32, #tpu.memory_space<vmem>>, vector<1x128xf32>
      %c0_28 = arith.constant 0 : index
      %c0_29 = arith.constant 0 : index
      %46 = vector.load %arg9[%c0_28, %c0_29] : memref<1x128xf32, #tpu.memory_space<vmem>>, vector<1x128xf32>
      %cst_30 = arith.constant dense<0.000000e+00> : vector<128xf32>
      %47 = vector.multi_reduction <add>, %42, %cst_30 [1] : vector<128x128xf32> to vector<128xf32>
      %48 = vector.shape_cast %47 : vector<128xf32> to vector<128x1xf32>
      %cst_31 = arith.constant 1.250000e-01 : f32
      %49 = vector.broadcast %cst_31 : f32 to vector<128x1xf32>
      %50 = arith.mulf %48, %49 : vector<128x1xf32>
      %51 = tpu.iota {dimensions = array<i32: 1>} : vector<128x128xi32>
      %c8_i32_32 = arith.constant 8 : i32
      %52 = vector.broadcast %c8_i32_32 : i32 to vector<128x128xi32>
      %53 = arith.cmpi slt, %51, %52 : vector<128x128xi32>
      %54 = vector.broadcast %50 : vector<128x1xf32> to vector<128x128xf32>
      %55 = arith.subf %42, %54 : vector<128x128xf32>
      %cst_33 = arith.constant 0.000000e+00 : f32
      %56 = vector.broadcast %cst_33 : f32 to vector<128x128xf32>
      %57 = arith.select %53, %55, %56 : vector<128x128xi1>, vector<128x128xf32>
      %58 = arith.mulf %57, %57 : vector<128x128xf32>
      %cst_34 = arith.constant dense<0.000000e+00> : vector<128xf32>
      %59 = vector.multi_reduction <add>, %58, %cst_34 [1] : vector<128x128xf32> to vector<128xf32>
      %60 = vector.shape_cast %59 : vector<128xf32> to vector<128x1xf32>
      %cst_35 = arith.constant 1.250000e-01 : f32
      %61 = vector.broadcast %cst_35 : f32 to vector<128x1xf32>
      %62 = arith.mulf %60, %61 : vector<128x1xf32>
      %cst_36 = arith.constant 9.99999974E-6 : f32
      %63 = vector.broadcast %cst_36 : f32 to vector<128x1xf32>
      %64 = arith.addf %62, %63 : vector<128x1xf32>
      %65 = math.rsqrt %64 : vector<128x1xf32>
      %66 = vector.broadcast %65 : vector<128x1xf32> to vector<128x128xf32>
      %67 = arith.mulf %57, %66 : vector<128x128xf32>
      %68 = vector.broadcast %45 : vector<1x128xf32> to vector<128x128xf32>
      %69 = arith.mulf %67, %68 : vector<128x128xf32>
      %70 = vector.broadcast %46 : vector<1x128xf32> to vector<128x128xf32>
      %71 = arith.addf %69, %70 : vector<128x128xf32>
      %72 = arith.truncf %71 : vector<128x128xf32> to vector<128x128xbf16>
      %c0_37 = arith.constant 0 : index
      %c0_38 = arith.constant 0 : index
      %73 = vector.load %arg11[%c0_37, %c0_38] : memref<128x128xbf16, #tpu.memory_space<vmem>>, vector<128x128xbf16>
      tpu.vector_store %arg11[%c0_37, %c0_38], %72 {strides = array<i32>} : memref<128x128xbf16, #tpu.memory_space<vmem>>, vector<128x128xbf16>,
    } else {
    }
    return
  }
  func.func @transform_0(%arg0: i32, %arg1: i32, %arg2: i32) -> (i32, i32) {
    %c0_i32 = arith.constant 0 : i32
    return %arg0, %arg2 : i32, i32
  }
  func.func @transform_1(%arg0: i32, %arg1: i32, %arg2: i32) -> (i32, i32) {
    %c0_i32 = arith.constant 0 : i32
    return %arg2, %arg1 : i32, i32
  }
  func.func @transform_2(%arg0: i32, %arg1: i32, %arg2: i32) -> (i32, i32) {
    %c0_i32 = arith.constant 0 : i32
    %c0_i32_0 = arith.constant 0 : i32
    return %c0_i32, %arg1 : i32, i32
  }
  func.func @transform_3(%arg0: i32, %arg1: i32, %arg2: i32) -> (i32, i32) {
    %c0_i32 = arith.constant 0 : i32
    %c0_i32_0 = arith.constant 0 : i32
    return %c0_i32, %arg1 : i32, i32
  }
  func.func @transform_4(%arg0: i32, %arg1: i32, %arg2: i32) -> (i32, i32) {
    %c0_i32 = arith.constant 0 : i32
    %c0_i32_0 = arith.constant 0 : i32
    return %c0_i32, %arg1 : i32, i32
  }
  func.func @transform_5(%arg0: i32, %arg1: i32, %arg2: i32) -> (i32, i32) {
    %c0_i32 = arith.constant 0 : i32
    %c0_i32_0 = arith.constant 0 : i32
    return %c0_i32, %arg1 : i32, i32
  }
  func.func @transform_6(%arg0: i32, %arg1: i32, %arg2: i32) -> (i32, i32) {
    %c0_i32 = arith.constant 0 : i32
    %c0_i32_0 = arith.constant 0 : i32
    return %c0_i32, %arg1 : i32, i32
  }
  func.func @transform_7(%arg0: i32, %arg1: i32, %arg2: i32) -> (i32, i32) {
    %c0_i32 = arith.constant 0 : i32
    return %arg0, %arg1 : i32, i32
  }
  func.func @transform_8(%arg0: i32, %arg1: i32, %arg2: i32) -> (i32, i32) {
    %c0_i32 = arith.constant 0 : i32
    return %arg0, %arg1 : i32, i32
  }
}

</mosaic_0001>

<bundles_post_ra>
// kernel: tpu_custom_call.1
= control target key start
LH: loop header
LB: loop body
LE: loop exit
PB: predicated region body
PF: predicated region fallthrough
CT: control target
= control target key end

     0   :  { %14 = vsyncpa [#allocation4], 0  ;;  %s2232_s0 = inlined_call_operand.hbm [shape: bf16[128,256], index: 0, kind: input, shape index: {}]   ;;  %s2233_s1 = inlined_call_operand.hbm [shape: bf16[256,128], index: 1, kind: input, shape index: {}]   ;;  %s2234_s2 = inlined_call_operand.vmem [shape: f32[1,128], index: 2, kind: input, shape index: {}]   ;;  %s2235_s3 = inlined_call_operand.vmem [shape: f32[1,128], index: 3, kind: input, shape index: {}]   ;;  %s2236_s4 = inlined_call_operand.vmem [shape: f32[1,128], index: 4, kind: input, shape index: {}]   ;;  %s2237_s5 = inlined_call_operand.vmem [shape: f32[1,128], index: 5, kind: input, shape index: {}]   ;;  %s2238_s6 = inlined_call_operand.vmem [shape: f32[1,128], index: 6, kind: input, shape index: {}]   ;;  %s2239_s7 = inlined_call_operand.hbm [shape: bf16[128,128], index: 7, kind: output, shape index: {0}]   ;;  %s2240_s8 = inlined_call_operand.hbm [shape: bf16[128,128], index: 8, kind: output, shape index: {1}]  }
   0x1   :  { %15 = vsyncpa [#allocation7], 0 }
   0x2   :  { %16 = vsyncpa [#allocation5], 0 }
   0x3   :  { %17 = vsyncpa [#allocation10], 0  ;;  %s1646_s27 = smov [#allocation3]   ;;  %s1550_s9 = scalar_lea.hbm %s2232_s0, 2048 }
   0x4   :  { %s23_s28 = sshll.u32 %s1646_s27, 4  ;;  %p1551_p0 = scmp.ne.s32.totalorder %s2232_s0, %s1550_s9  ;;  %s24_s28 = int_to_ptr.vmem [resolvable:$true] %s23_s28 }
   0x5   :  { %p1554_p1 = scmp.lt.u32.totalorder %s1550_s9, %s2232_s0 }
   0x7   :  { %p1556_p2 = pnand %p1554_p1, %p1551_p0 }
   0x9   :  { %1559 = shalt.err (!%p1556_p2)
}
   0xa   :  { %s1560_s14 = scalar_lea.vmem %s24_s28, 2048  ;;  %p1565_p4 = scmp.lt.s32.totalorder %s24_s28, %s24_s28 }
   0xb   :  { %p1561_p3 = scmp.ne.s32.totalorder %s24_s28, %s1560_s14  ;;  %p1566_p5 = scmp.lt.s32.totalorder %s1560_s14, %s1560_s14 }
   0xd   :  { %p1567_p6 = por %p1566_p5, %p1565_p4 }
   0xf   :  { %p1568_p7 = pnand %p1567_p6, %p1561_p3 }
  0x11   :  { %1571 = shalt.err (!%p1568_p7)
}
  0x12   :  { %s1647_s15 = smov 128   ;;  %s1648_s16 = smov 8  }
  0x13   :  { %29 = dma.hbm_to_vmem [thread:$0]  %s2232_s0, 2048, %s24_s28, [#allocation4], %s1647_s15, %s1647_s15, %s1648_s16  }
  0x14   :  { %s1649_s19 = smov [#allocation6]   ;;  %s1572_s23 = scalar_lea.hbm %s2233_s1, 2048 }
  0x15   :  { %s35_s20 = sshll.u32 %s1649_s19, 4  ;;  %p1573_p8 = scmp.ne.s32.totalorder %s2233_s1, %s1572_s23  ;;  %s36_s20 = int_to_ptr.vmem [resolvable:$true] %s35_s20 }
  0x16   :  { %p1576_p9 = scmp.lt.u32.totalorder %s1572_s23, %s2233_s1 }
  0x18   :  { %p1578_p10 = pnand %p1576_p9, %p1573_p8 }
  0x1a   :  { %1581 = shalt.err (!%p1578_p10)
}
  0x1b   :  { %s1582_s29 = scalar_lea.vmem %s36_s20, 2048  ;;  %p1587_p12 = scmp.lt.s32.totalorder %s36_s20, %s36_s20 }
  0x1c   :  { %p1583_p11 = scmp.ne.s32.totalorder %s36_s20, %s1582_s29  ;;  %p1588_p13 = scmp.lt.s32.totalorder %s1582_s29, %s1582_s29 }
  0x1e   :  { %p1589_p0 = por %p1588_p13, %p1587_p12 }
  0x20   :  { %p1590_p1 = pnand %p1589_p0, %p1583_p11 }
  0x22   :  { %1593 = shalt.err (!%p1590_p1)
}
  0x23   :  { %s1650_s0 = smov 64   ;;  %s1651_s28 = smov 4  }
  0x24   :  { %41 = dma.hbm_to_vmem [thread:$0]  %s2233_s1, 2048, %s36_s20, [#allocation7], %s1650_s0, %s1650_s0, %s1651_s28  }
  0x25   :  { %1638 = dma.done.wait [#allocation4], 2048  }
  0x26   :  { %1639 = vsyncadd [#allocation4], 4294965248 }
  0x27   :  { %1640 = dma.done.wait [#allocation7], 2048  }
  0x28   :  { %1641 = vsyncadd [#allocation7], 4294965248  ;;  %v1446_v0 = vld [vmem:[#allocation6 + $0x40] sm:$0xff]   ;;  %v1448_v2 = vld [vmem:[#allocation6 + $0x48] sm:$0xff]  }
  0x29   :  { %v1447_v1 = vld [vmem:[#allocation6] sm:$0xff]   ;;  %1358 = vmatprep.subr.bf16.mxu0 %v1446_v0  ;;  %1422 = vmatprep.subr.bf16.mxu1 %v1446_v0  ;;  %v1449_v3 = vld [vmem:[#allocation6 + $0x8] sm:$0xff]   ;;  %v1450_v4 = vld [vmem:[#allocation6 + $0x50] sm:$0xff]  }
  0x2a   :  { %1359 = vmatpush3.bf16.msra.mxu0 %v1447_v1  ;;  %1430 = vmatpush3.bf16.msra.mxu1 %v1447_v1  ;;  %v1451_v5 = vld [vmem:[#allocation6 + $0x10] sm:$0xff]   ;;  %v1452_v6 = vld [vmem:[#allocation6 + $0x58] sm:$0xff]   ;;  %v1454_v8 = vld [vmem:[#allocation6 + $0x60] sm:$0xff]  }
  0x2b   :  { %1360 = vmatprep.subr.bf16.mxu0 %v1448_v2  ;;  %1423 = vmatprep.subr.bf16.mxu1 %v1448_v2  ;;  %v1453_v7 = vld [vmem:[#allocation6 + $0x18] sm:$0xff]   ;;  %v1455_v9 = vld [vmem:[#allocation6 + $0x20] sm:$0xff]   ;;  %v1456_v10 = vld [vmem:[#allocation6 + $0x68] sm:$0xff]  }
  0x2c   :  { %v1464_v11 = vld [vmem:[#allocation3 + $0x4] ss:$8 sps:$4 sm:$0xff]   ;;  %v1458_v14 = vld [vmem:[#allocation6 + $0x70] sm:$0xff]   ;;  %v1460_v16 = vld [vmem:[#allocation6 + $0x78] sm:$0xff]  }
  0x2d   :  { %v1467_v12 = vld [vmem:[#allocation3 + $0x44] ss:$8 sps:$4 sm:$0xff]   ;;  %351 = vmatprep.mubr.bf16.mxu0 %v1464_v11  ;;  %v1459_v15 = vld [vmem:[#allocation6 + $0x30] sm:$0xff]   ;;  %v1461_v17 = vld [vmem:[#allocation6 + $0x38] sm:$0xff]  }
  0x2e   :  { %1361 = vmatpush3.bf16.msra.mxu0 %v1449_v3  ;;  %1431 = vmatpush3.bf16.msra.mxu1 %v1449_v3  ;;  %v1457_v13 = vld [vmem:[#allocation6 + $0x28] sm:$0xff]   ;;  %v1468_v20 = vld [vmem:[#allocation3 + $0x14] ss:$8 sps:$4 sm:$0xff]   ;;  %v1470_v22 = vld [vmem:[#allocation3 + $0x10] ss:$8 sps:$4 sm:$0xff]  }
  0x2f   :  { %1362 = vmatprep.subr.bf16.mxu0 %v1450_v4  ;;  %1424 = vmatprep.subr.bf16.mxu1 %v1450_v4  ;;  %v1462_v18 = vld [vmem:[#allocation3] ss:$8 sps:$4 sm:$0xff]   ;;  %v1471_v21 = vld [vmem:[#allocation3 + $0x54] ss:$8 sps:$4 sm:$0xff]   ;;  %v1473_v23 = vld [vmem:[#allocation3 + $0x50] ss:$8 sps:$4 sm:$0xff]  }
  0x30   :  { %383 = vmatprep.mubr.bf16.mxu1 %v1467_v12  ;;  %v1465_v19 = vld [vmem:[#allocation3 + $0x40] ss:$8 sps:$4 sm:$0xff]   ;;  %v1474_v24 = vld [vmem:[#allocation3 + $0x24] ss:$8 sps:$4 sm:$0xff]   ;;  %v1480_v28 = vld [vmem:[#allocation3 + $0x34] ss:$8 sps:$4 sm:$0xff]  }
  0x31   :  { %v1477_v25 = vld [vmem:[#allocation3 + $0x64] ss:$8 sps:$4 sm:$0xff]   ;;  %v1476_v26 = vld [vmem:[#allocation3 + $0x20] ss:$8 sps:$4 sm:$0xff]   ;;  %v1483_v29 = vld [vmem:[#allocation3 + $0x74] ss:$8 sps:$4 sm:$0xff]  }
  0x32   :  { %1363 = vmatpush3.bf16.msra.mxu0 %v1451_v5  ;;  %1432 = vmatpush3.bf16.msra.mxu1 %v1451_v5  ;;  %v1479_v27 = vld [vmem:[#allocation3 + $0x60] ss:$8 sps:$4 sm:$0xff]   ;;  %v1482_v30 = vld [vmem:[#allocation3 + $0x30] ss:$8 sps:$4 sm:$0xff]  }
  0x33   :  { %1364 = vmatprep.subr.bf16.mxu0 %v1452_v6  ;;  %1425 = vmatprep.subr.bf16.mxu1 %v1452_v6  ;;  %v1485_v31 = vld [vmem:[#allocation3 + $0x70] ss:$8 sps:$4 sm:$0xff]   ;;  %v1729_v36 = vld [vmem:[%s2234_s2] ss:$0 sm:$0xff] }
  0x36   :  { %1365 = vmatpush3.bf16.msra.mxu0 %v1453_v7  ;;  %1433 = vmatpush3.bf16.msra.mxu1 %v1453_v7 }
  0x37   :  { %1366 = vmatprep.subr.bf16.mxu0 %v1454_v8  ;;  %1426 = vmatprep.subr.bf16.mxu1 %v1454_v8 }
  0x3a   :  { %1367 = vmatpush3.bf16.msra.mxu0 %v1455_v9  ;;  %1434 = vmatpush3.bf16.msra.mxu1 %v1455_v9 }
  0x3b   :  { %1368 = vmatprep.subr.bf16.mxu0 %v1456_v10  ;;  %1427 = vmatprep.subr.bf16.mxu1 %v1456_v10 }
  0x3e   :  { %1369 = vmatpush3.bf16.msra.mxu0 %v1457_v13  ;;  %1435 = vmatpush3.bf16.msra.mxu1 %v1457_v13 }
  0x3f   :  { %1370 = vmatprep.subr.bf16.mxu0 %v1458_v14  ;;  %1428 = vmatprep.subr.bf16.mxu1 %v1458_v14 }
  0x42   :  { %1371 = vmatpush3.bf16.msra.mxu0 %v1459_v15  ;;  %1436 = vmatpush3.bf16.msra.mxu1 %v1459_v15 }
  0x43   :  { %1372 = vmatprep.subr.bf16.mxu0 %v1460_v16  ;;  %1429 = vmatprep.subr.bf16.mxu1 %v1460_v16 }
  0x46   :  { %1373 = vmatpush3.bf16.msra.mxu0 %v1461_v17  ;;  %1437 = vmatpush3.bf16.msra.mxu1 %v1461_v17 }
  0x49   :  { %352 = vmatmul.mubr.bf16.vlgmr.msra.gmra.mrb[0].mxu0 %v1462_v18  ;;  %384 = vmatmul.mubr.bf16.vlgmr.msra.gmra.mrb[0].mxu1 %v1465_v19 }
  0x4a   :  { %359 = vmatprep.mubr.bf16.mxu0 %v1468_v20  ;;  %391 = vmatprep.mubr.bf16.mxu1 %v1471_v21 }
  0x51   :  { %360 = vmatmul.mubr.bf16.gmra.mrb[4].mxu0 %v1470_v22  ;;  %392 = vmatmul.mubr.bf16.gmra.mrb[4].mxu1 %v1473_v23 }
  0x52   :  { %367 = vmatprep.mubr.bf16.mxu0 %v1474_v24  ;;  %399 = vmatprep.mubr.bf16.mxu1 %v1477_v25 }
  0x59   :  { %368 = vmatmul.mubr.bf16.gmra.mrb[8].mxu0 %v1476_v26  ;;  %400 = vmatmul.mubr.bf16.gmra.mrb[8].mxu1 %v1479_v27 }
  0x5a   :  { %375 = vmatprep.mubr.bf16.mxu0 %v1480_v28  ;;  %407 = vmatprep.mubr.bf16.mxu1 %v1483_v29 }
  0x61   :  { %376 = vmatmul.mubr.bf16.gmra.mrb[12].mxu0 %v1482_v30  ;;  %408 = vmatmul.mubr.bf16.gmra.mrb[12].mxu1 %v1485_v31 }
 0x11c   :  { %v1374_v32 = vpop.f32.mrb[0].mxu0  ;;  %v1398_v33 = vpop.f32.mrb[0].mxu1 }
 0x11d   :  { %v1375_v34 = vpop.f32.mrb[1].mxu0  ;;  %v1399_v35 = vpop.f32.mrb[1].mxu1 }
 0x11e   :  { %v1376_v37 = vadd.f32 %v1375_v34, %v1374_v32  ;;  %v1400_v38 = vadd.f32 %v1399_v35, %v1398_v33  ;;  %v1377_v39 = vpop.f32.mrb[2].mxu0  ;;  %v1401_v40 = vpop.f32.mrb[2].mxu1  ;;  %v540_v33 = vlaneseq }
 0x11f   :  { %v1378_v41 = vpop.f32.mrb[3].mxu0  ;;  %v1402_v42 = vpop.f32.mrb[3].mxu1 }
 0x120   :  { %v1379_v43 = vadd.f32 %v1378_v41, %v1377_v39  ;;  %v1403_v44 = vadd.f32 %v1402_v42, %v1401_v40  ;;  %v1732_v45 = vadd.f32 %v1376_v37, %v1729_v36  ;;  %v1739_v47 = vadd.f32 %v1400_v38, %v1729_v36 }
 0x121   :  { %v1795_v34 = vand.u32 127, %v540_v33 }
 0x122   :  { %492 = vadd.xlane.f32.xlu0 %v1732_v45  ;;  %v1736_v46 = vadd.f32 %v1403_v44, %v1729_v36  ;;  %v1747_v60 = vadd.f32 %v1379_v43, %v1729_v36 }
 0x123   :  { %vm542_vm0 = vcmp.lt.s32.totalorder %v1795_v34, 8 }
 0x124   :  { %510 = vadd.xlane.f32.xlu1 %v1736_v46  ;;  %v1380_v48 = vpop.f32.mrb[4].mxu0  ;;  %v1404_v49 = vpop.f32.mrb[4].mxu1 }
 0x125   :  { %v1381_v50 = vpop.f32.mrb[5].mxu0  ;;  %v1405_v51 = vpop.f32.mrb[5].mxu1 }
 0x126   :  { %v1382_v52 = vadd.f32 %v1381_v50, %v1380_v48  ;;  %508 = vadd.xlane.f32.xlu0 %v1739_v47  ;;  %v1383_v53 = vpop.f32.mrb[6].mxu0  ;;  %v1406_v54 = vadd.f32 %v1405_v51, %v1404_v49  ;;  %v1407_v55 = vpop.f32.mrb[6].mxu1 }
 0x127   :  { %v1384_v56 = vpop.f32.mrb[7].mxu0  ;;  %v1408_v57 = vpop.f32.mrb[7].mxu1 }
 0x128   :  { %v1385_v58 = vadd.f32 %v1384_v56, %v1383_v53  ;;  %v1744_v59 = vadd.f32 %v1382_v52, %v1729_v36  ;;  %v1409_v61 = vadd.f32 %v1408_v57, %v1407_v55  ;;  %v1755_v63 = vadd.f32 %v1406_v54, %v1729_v36 }
 0x12a   :  { %496 = vadd.xlane.f32.xlu1 %v1744_v59  ;;  %494 = vadd.xlane.f32.xlu0 %v1747_v60  ;;  %v1752_v62 = vadd.f32 %v1385_v58, %v1729_v36  ;;  %v1760_v7 = vadd.f32 %v1409_v61, %v1729_v36 }
 0x12c   :  { %v1386_v0 = vpop.f32.mrb[8].mxu0  ;;  %v1410_v1 = vpop.f32.mrb[8].mxu1 }
 0x12d   :  { %v1387_v2 = vpop.f32.mrb[9].mxu0  ;;  %v1411_v3 = vpop.f32.mrb[9].mxu1 }
 0x12e   :  { %v1388_v4 = vadd.f32 %v1387_v2, %v1386_v0  ;;  %498 = vadd.xlane.f32.xlu1 %v1752_v62  ;;  %512 = vadd.xlane.f32.xlu0 %v1755_v63  ;;  %v1389_v5 = vpop.f32.mrb[10].mxu0  ;;  %v1412_v6 = vadd.f32 %v1411_v3, %v1410_v1  ;;  %v1413_v8 = vpop.f32.mrb[10].mxu1 }
 0x12f   :  { %v1390_v9 = vpop.f32.mrb[11].mxu0  ;;  %v1414_v10 = vpop.f32.mrb[11].mxu1 }
 0x130   :  { %v1391_v11 = vadd.f32 %v1390_v9, %v1389_v5  ;;  %v1763_v12 = vadd.f32 %v1388_v4, %v1729_v36  ;;  %v1415_v13 = vadd.f32 %v1414_v10, %v1413_v8  ;;  %v1771_v15 = vadd.f32 %v1412_v6, %v1729_v36 }
 0x132   :  { %514 = vadd.xlane.f32.xlu1 %v1760_v7  ;;  %500 = vadd.xlane.f32.xlu0 %v1763_v12  ;;  %v1768_v14 = vadd.f32 %v1391_v11, %v1729_v36  ;;  %v1776_v23 = vadd.f32 %v1415_v13, %v1729_v36 }
 0x134   :  { %v1392_v16 = vpop.f32.mrb[12].mxu0  ;;  %v1416_v17 = vpop.f32.mrb[12].mxu1 }
 0x135   :  { %v1393_v18 = vpop.f32.mrb[13].mxu0  ;;  %v1417_v19 = vpop.f32.mrb[13].mxu1 }
 0x136   :  { %v1394_v20 = vadd.f32 %v1393_v18, %v1392_v16  ;;  %502 = vadd.xlane.f32.xlu1 %v1768_v14  ;;  %516 = vadd.xlane.f32.xlu0 %v1771_v15  ;;  %v1395_v21 = vpop.f32.mrb[14].mxu0  ;;  %v1418_v22 = vadd.f32 %v1417_v19, %v1416_v17  ;;  %v1419_v24 = vpop.f32.mrb[14].mxu1 }
 0x137   :  { %v1396_v25 = vpop.f32.mrb[15].mxu0  ;;  %v1420_v26 = vpop.f32.mrb[15].mxu1 }
 0x138   :  { %v1397_v27 = vadd.f32 %v1396_v25, %v1395_v21  ;;  %v1779_v28 = vadd.f32 %v1394_v20, %v1729_v36  ;;  %v1421_v29 = vadd.f32 %v1420_v26, %v1419_v24  ;;  %v1787_v31 = vadd.f32 %v1418_v22, %v1729_v36 }
 0x13a   :  { %518 = vadd.xlane.f32.xlu1 %v1776_v23  ;;  %504 = vadd.xlane.f32.xlu0 %v1779_v28  ;;  %v1784_v30 = vadd.f32 %v1397_v27, %v1729_v36  ;;  %v1792_v32 = vadd.f32 %v1421_v29, %v1729_v36 }
 0x13e   :  { %506 = vadd.xlane.f32.xlu1 %v1784_v30  ;;  %520 = vadd.xlane.f32.xlu0 %v1787_v31 }
 0x142   :  { %522 = vadd.xlane.f32.xlu1 %v1792_v32 }
 0x1af   :  { %v493_v35 = vpop.xlane.xlu0 %492 }
 0x1b0   :  { %v524_v37 = vmul.f32 0.125, %v493_v35 }
 0x1b1   :  { %v511_v39 = vpop.xlane.xlu1 %510 }
 0x1b2   :  { %v543_v38 = vsub.f32 %v1732_v45, %v524_v37  ;;  %v533_v43 = vmul.f32 0.125, %v511_v39 }
 0x1b3   :  { %v509_v40 = vpop.xlane.xlu0 %508 }
 0x1b4   :  { %v532_v41 = vmul.f32 0.125, %v509_v40  ;;  %v1801_v42 = vsel %vm542_vm0, %v543_v38, 0.0  ;;  %v552_v53 = vsub.f32 %v1736_v46, %v533_v43 }
 0x1b5   :  { %v575_v36 = vmul.f32 %v1801_v42, %v1801_v42 }
 0x1b6   :  { %v551_v44 = vsub.f32 %v1739_v47, %v532_v41  ;;  %v1831_v2 = vsel %vm542_vm0, %v552_v53, 0.0 }
 0x1b7   :  { %v497_v48 = vpop.xlane.xlu1 %496  ;;  %591 = vadd.xlane.f32.xlu0 %v575_v36  ;;  %v495_v49 = vpop.xlane.xlu0 %494  ;;  %v584_v9 = vmul.f32 %v1831_v2, %v1831_v2 }
 0x1b8   :  { %v526_v50 = vmul.f32 0.125, %v497_v48  ;;  %v525_v51 = vmul.f32 0.125, %v495_v49  ;;  %v1808_v45 = vsel %vm542_vm0, %v551_v44, 0.0 }
 0x1b9   :  { %v583_v52 = vmul.f32 %v1808_v45, %v1808_v45 }
 0x1ba   :  { %v545_v54 = vsub.f32 %v1744_v59, %v526_v50  ;;  %v544_v55 = vsub.f32 %v1747_v60, %v525_v51 }
 0x1bb   :  { %v499_v56 = vpop.xlane.xlu1 %498  ;;  %607 = vadd.xlane.f32.xlu0 %v583_v52  ;;  %v513_v47 = vpop.xlane.xlu0 %512 }
 0x1bc   :  { %v527_v57 = vmul.f32 0.125, %v499_v56  ;;  %v534_v58 = vmul.f32 0.125, %v513_v47  ;;  %v1817_v61 = vsel %vm542_vm0, %v545_v54, 0.0  ;;  %v1821_v0 = vsel %vm542_vm0, %v544_v55, 0.0 }
 0x1bd   :  { %v577_v46 = vmul.f32 %v1817_v61, %v1817_v61  ;;  %v576_v59 = vmul.f32 %v1821_v0, %v1821_v0 }
 0x1be   :  { %v546_v60 = vsub.f32 %v1752_v62, %v527_v57  ;;  %v553_v1 = vsub.f32 %v1755_v63, %v534_v58 }
 0x1bf   :  { %v515_v3 = vpop.xlane.xlu1 %514  ;;  %595 = vadd.xlane.f32.xlu0 %v577_v46  ;;  %593 = vadd.xlane.f32.xlu1 %v576_v59  ;;  %v501_v4 = vpop.xlane.xlu0 %500 }
 0x1c0   :  { %v535_v5 = vmul.f32 0.125, %v515_v3  ;;  %v528_v6 = vmul.f32 0.125, %v501_v4  ;;  %v1835_v8 = vsel %vm542_vm0, %v553_v1, 0.0  ;;  %v1845_v11 = vsel %vm542_vm0, %v546_v60, 0.0 }
 0x1c1   :  { %v585_v62 = vmul.f32 %v1835_v8, %v1835_v8  ;;  %v578_v20 = vmul.f32 %v1845_v11, %v1845_v11 }
 0x1c2   :  { %v554_v63 = vsub.f32 %v1760_v7, %v535_v5  ;;  %v547_v10 = vsub.f32 %v1763_v12, %v528_v6 }
 0x1c3   :  { %v503_v13 = vpop.xlane.xlu1 %502  ;;  %609 = vadd.xlane.f32.xlu1 %v584_v9  ;;  %611 = vadd.xlane.f32.xlu0 %v585_v62  ;;  %v517_v16 = vpop.xlane.xlu0 %516 }
 0x1c4   :  { %v529_v17 = vmul.f32 0.125, %v503_v13  ;;  %v536_v18 = vmul.f32 0.125, %v517_v16  ;;  %v1849_v19 = vsel %vm542_vm0, %v547_v10, 0.0  ;;  %v1859_v22 = vsel %vm542_vm0, %v554_v63, 0.0 }
 0x1c5   :  { %v579_v7 = vmul.f32 %v1849_v19, %v1849_v19  ;;  %v586_v33 = vmul.f32 %v1859_v22, %v1859_v22 }
 0x1c6   :  { %v548_v12 = vsub.f32 %v1768_v14, %v529_v17  ;;  %v555_v21 = vsub.f32 %v1771_v15, %v536_v18  ;;  %v1913_v18 = vld [vmem:[%s2235_s3] ss:$0 sm:$0xff]  ;;  %s1652_s3 = smov [#allocation8]  }
 0x1c7   :  { %v519_v24 = vpop.xlane.xlu1 %518  ;;  %597 = vadd.xlane.f32.xlu1 %v578_v20  ;;  %599 = vadd.xlane.f32.xlu0 %v579_v7  ;;  %v505_v25 = vpop.xlane.xlu0 %504 }
 0x1c8   :  { %v537_v26 = vmul.f32 0.125, %v519_v24  ;;  %v530_v27 = vmul.f32 0.125, %v505_v25  ;;  %v1863_v29 = vsel %vm542_vm0, %v555_v21, 0.0  ;;  %v1873_v37 = vsel %vm542_vm0, %v548_v12, 0.0  ;;  %v1919_v25 = vld [vmem:[%s2236_s4] ss:$0 sm:$0xff] }
 0x1c9   :  { %v587_v14 = vmul.f32 %v1863_v29, %v1863_v29  ;;  %v580_v43 = vmul.f32 %v1873_v37, %v1873_v37  ;;  %s1134_s4 = sshll.u32 %s1652_s3, 4  ;;  %s1135_s4 = int_to_ptr.vmem [resolvable:$true] %s1134_s4 }
 0x1ca   :  { %v556_v15 = vsub.f32 %v1776_v23, %v537_v26  ;;  %v549_v35 = vsub.f32 %v1779_v28, %v530_v27  ;;  %s1594_s14 = scalar_lea.vmem %s1135_s4, 1024  ;;  %p1599_p3 = scmp.lt.s32.totalorder %s1135_s4, %s1135_s4 }
 0x1cb   :  { %v507_v38 = vpop.xlane.xlu1 %506  ;;  %613 = vadd.xlane.f32.xlu1 %v586_v33  ;;  %615 = vadd.xlane.f32.xlu0 %v587_v14  ;;  %v521_v39 = vpop.xlane.xlu0 %520  ;;  %p1595_p2 = scmp.ne.s32.totalorder %s1135_s4, %s1594_s14  ;;  %p1600_p4 = scmp.lt.s32.totalorder %s1594_s14, %s1594_s14 }
 0x1cc   :  { %v531_v40 = vmul.f32 0.125, %v507_v38  ;;  %v538_v41 = vmul.f32 0.125, %v521_v39  ;;  %v1877_v36 = vsel %vm542_vm0, %v549_v35, 0.0  ;;  %v1887_v48 = vsel %vm542_vm0, %v556_v15, 0.0 }
 0x1cd   :  { %v581_v23 = vmul.f32 %v1877_v36, %v1877_v36  ;;  %v588_v52 = vmul.f32 %v1887_v48, %v1887_v48  ;;  %p1601_p5 = por %p1600_p4, %p1599_p3 }
 0x1ce   :  { %v550_v28 = vsub.f32 %v1784_v30, %v531_v40  ;;  %v557_v44 = vsub.f32 %v1787_v31, %v538_v41 }
 0x1cf   :  { %v523_v49 = vpop.xlane.xlu1 %522  ;;  %601 = vadd.xlane.f32.xlu1 %v580_v43  ;;  %603 = vadd.xlane.f32.xlu0 %v581_v23  ;;  %p1602_p6 = pnand %p1601_p5, %p1595_p2 }
 0x1d0   :  { %v539_v50 = vmul.f32 0.125, %v523_v49  ;;  %v1891_v51 = vsel %vm542_vm0, %v557_v44, 0.0  ;;  %v1900_v53 = vsel %vm542_vm0, %v550_v28, 0.0 }
 0x1d1   :  { %v589_v30 = vmul.f32 %v1891_v51, %v1891_v51  ;;  %v582_v54 = vmul.f32 %v1900_v53, %v1900_v53 }
 0x1d2   :  { %v558_v31 = vsub.f32 %v1792_v32, %v539_v50 }
 0x1d3   :  { %617 = vadd.xlane.f32.xlu1 %v588_v52  ;;  %619 = vadd.xlane.f32.xlu0 %v589_v30 }
 0x1d4   :  { %v1906_v55 = vsel %vm542_vm0, %v558_v31, 0.0 }
 0x1d5   :  { %v590_v56 = vmul.f32 %v1906_v55, %v1906_v55 }
 0x1d7   :  { %605 = vadd.xlane.f32.xlu1 %v582_v54 }
 0x1db   :  { %621 = vadd.xlane.f32.xlu1 %v590_v56 }
 0x244   :  { %v592_v47 = vpop.xlane.xlu0 %591 }
 0x245   :  { %v623_v32 = vmul.f32 0.125, %v592_v47 }
 0x247   :  { %v639_v57 = vadd.f32 1e-05, %v623_v32 }
 0x248   :  { %v608_v58 = vpop.xlane.xlu0 %607 }
 0x249   :  { %1486 = vrsqrt.f32 %v639_v57  ;;  %v631_v46 = vmul.f32 0.125, %v608_v58 }
 0x24b   :  { %v647_v59 = vadd.f32 1e-05, %v631_v46 }
 0x24c   :  { %v594_v60 = vpop.xlane.xlu1 %593  ;;  %v596_v1 = vpop.xlane.xlu0 %595 }
 0x24d   :  { %1488 = vrsqrt.f32 %v647_v59  ;;  %v624_v3 = vmul.f32 0.125, %v594_v60  ;;  %v625_v4 = vmul.f32 0.125, %v596_v1 }
 0x24f   :  { %v640_v5 = vadd.f32 1e-05, %v624_v3  ;;  %v641_v6 = vadd.f32 1e-05, %v625_v4 }
 0x250   :  { %v610_v9 = vpop.xlane.xlu1 %609  ;;  %v612_v62 = vpop.xlane.xlu0 %611 }
 0x251   :  { %1490 = vrsqrt.f32 %v640_v5  ;;  %v632_v63 = vmul.f32 0.125, %v610_v9  ;;  %v633_v10 = vmul.f32 0.125, %v612_v62 }
 0x252   :  { %1492 = vrsqrt.f32 %v641_v6 }
 0x253   :  { %v1487_v13 = vpop.eup %1486  ;;  %v648_v16 = vadd.f32 1e-05, %v632_v63  ;;  %v649_v17 = vadd.f32 1e-05, %v633_v10 }
 0x254   :  { %v598_v20 = vpop.xlane.xlu1 %597  ;;  %v600_v7 = vpop.xlane.xlu0 %599  ;;  %v671_v12 = vmul.f32 %v1487_v13, %v1801_v42 }
 0x255   :  { %1494 = vrsqrt.f32 %v648_v16  ;;  %v626_v21 = vmul.f32 0.125, %v598_v20  ;;  %v627_v24 = vmul.f32 0.125, %v600_v7 }
 0x256   :  { %1496 = vrsqrt.f32 %v649_v17  ;;  %v693_v26 = vmul.f32 %v1913_v18, %v671_v12 }
 0x257   :  { %v1489_v27 = vpop.eup %1488  ;;  %v642_v33 = vadd.f32 1e-05, %v626_v21  ;;  %v643_v14 = vadd.f32 1e-05, %v627_v24 }
 0x258   :  { %v614_v15 = vpop.xlane.xlu1 %613  ;;  %v616_v35 = vpop.xlane.xlu0 %615  ;;  %v1923_v38 = vadd.f32 %v1919_v25, %v693_v26  ;;  %v679_v42 = vmul.f32 %v1489_v27, %v1808_v45 }
 0x259   :  { %1498 = vrsqrt.f32 %v642_v33  ;;  %v634_v39 = vmul.f32 0.125, %v614_v15  ;;  %v635_v40 = vmul.f32 0.125, %v616_v35 }
 0x25a   :  { %1500 = vrsqrt.f32 %v643_v14  ;;  %813 = vadd.xlane.f32.xlu0 %v1923_v38  ;;  %v701_v41 = vmul.f32 %v1913_v18, %v679_v42 }
 0x25b   :  { %v1491_v43 = vpop.eup %1490  ;;  %v650_v23 = vadd.f32 1e-05, %v634_v39  ;;  %v651_v28 = vadd.f32 1e-05, %v635_v40 }
 0x25c   :  { %v1493_v44 = vpop.eup %1492  ;;  %v602_v49 = vpop.xlane.xlu1 %601  ;;  %v1929_v52 = vadd.f32 %v1919_v25, %v701_v41  ;;  %v672_v30 = vmul.f32 %v1491_v43, %v1821_v0 }
 0x25d   :  { %v604_v50 = vpop.xlane.xlu0 %603  ;;  %1502 = vrsqrt.f32 %v650_v23  ;;  %v628_v45 = vmul.f32 0.125, %v602_v49  ;;  %v673_v54 = vmul.f32 %v1493_v44, %v1817_v61 }
 0x25e   :  { %v629_v31 = vmul.f32 0.125, %v604_v50  ;;  %1504 = vrsqrt.f32 %v651_v28  ;;  %829 = vadd.xlane.f32.xlu0 %v1929_v52  ;;  %v694_v56 = vmul.f32 %v1913_v18, %v672_v30 }
 0x25f   :  { %v1495_v47 = vpop.eup %1494  ;;  %v644_v32 = vadd.f32 1e-05, %v628_v45  ;;  %v695_v58 = vmul.f32 %v1913_v18, %v673_v54 }
 0x260   :  { %v645_v57 = vadd.f32 1e-05, %v629_v31  ;;  %v1497_v46 = vpop.eup %1496  ;;  %v618_v59 = vpop.xlane.xlu1 %617  ;;  %v1937_v0 = vadd.f32 %v1919_v25, %v694_v56  ;;  %v680_v1 = vmul.f32 %v1495_v47, %v1831_v2 }
 0x261   :  { %v620_v60 = vpop.xlane.xlu0 %619  ;;  %1506 = vrsqrt.f32 %v644_v32  ;;  %v636_v61 = vmul.f32 0.125, %v618_v59  ;;  %v1941_v4 = vadd.f32 %v1919_v25, %v695_v58  ;;  %v681_v9 = vmul.f32 %v1497_v46, %v1835_v8 }
 0x262   :  { %v637_v3 = vmul.f32 0.125, %v620_v60  ;;  %1508 = vrsqrt.f32 %v645_v57  ;;  %815 = vadd.xlane.f32.xlu1 %v1937_v0  ;;  %v1267_v5 = vpack.c.bf16 %v1937_v0, %v1923_v38  ;;  %v702_v6 = vmul.f32 %v1913_v18, %v680_v1 }
 0x263   :  { %v1499_v62 = vpop.eup %1498  ;;  %v652_v63 = vadd.f32 1e-05, %v636_v61  ;;  %817 = vadd.xlane.f32.xlu0 %v1941_v4  ;;  %v703_v17 = vmul.f32 %v1913_v18, %v681_v9 }
 0x264   :  { %v653_v10 = vadd.f32 1e-05, %v637_v3  ;;  %v1501_v2 = vpop.eup %1500  ;;  %1268 = vst [vmem:[#allocation8] sm:$0xff] %v1267_v5   ;;  %v606_v13 = vpop.xlane.xlu1 %605  ;;  %v1950_v16 = vadd.f32 %v1919_v25, %v702_v6  ;;  %v674_v20 = vmul.f32 %v1499_v62, %v1845_v11 }
 0x265   :  { %1510 = vrsqrt.f32 %v652_v63  ;;  %v630_v7 = vmul.f32 0.125, %v606_v13  ;;  %v675_v12 = vmul.f32 %v1501_v2, %v1849_v19  ;;  %v1959_v21 = vadd.f32 %v1919_v25, %v703_v17 }
 0x266   :  { %1512 = vrsqrt.f32 %v653_v10  ;;  %831 = vadd.xlane.f32.xlu1 %v1950_v16  ;;  %v1287_v8 = vpack.c.bf16 %v1950_v16, %v1929_v52  ;;  %v696_v24 = vmul.f32 %v1913_v18, %v674_v20 }
 0x267   :  { %v1503_v26 = vpop.eup %1502  ;;  %v646_v27 = vadd.f32 1e-05, %v630_v7  ;;  %v697_v33 = vmul.f32 %v1913_v18, %v675_v12  ;;  %833 = vadd.xlane.f32.xlu0 %v1959_v21 }
 0x268   :  { %v1505_v11 = vpop.eup %1504  ;;  %1347 = vst [vmem:[#allocation8 + $0x20] sm:$0xff] %v1287_v8   ;;  %v622_v19 = vpop.xlane.xlu1 %621  ;;  %v1965_v14 = vadd.f32 %v1919_v25, %v696_v24  ;;  %v682_v15 = vmul.f32 %v1503_v26, %v1859_v22 }
 0x269   :  { %1514 = vrsqrt.f32 %v646_v27  ;;  %v638_v35 = vmul.f32 0.125, %v622_v19  ;;  %v1969_v42 = vadd.f32 %v1919_v25, %v697_v33  ;;  %v683_v39 = vmul.f32 %v1505_v11, %v1863_v29 }
 0x26a   :  { %819 = vadd.xlane.f32.xlu1 %v1965_v14  ;;  %v1272_v40 = vpack.c.bf16 %v1965_v14, %v1941_v4  ;;  %v704_v41 = vmul.f32 %v1913_v18, %v682_v15 }
 0x26b   :  { %v1507_v43 = vpop.eup %1506  ;;  %v654_v23 = vadd.f32 1e-05, %v638_v35  ;;  %v705_v28 = vmul.f32 %v1913_v18, %v683_v39  ;;  %821 = vadd.xlane.f32.xlu0 %v1969_v42 }
 0x26c   :  { %v1509_v44 = vpop.eup %1508  ;;  %1344 = vst [vmem:[#allocation8 + $0x8] sm:$0xff] %v1272_v40   ;;  %v1979_v22 = vadd.f32 %v1919_v25, %v704_v41  ;;  %v676_v29 = vmul.f32 %v1507_v43, %v1873_v37 }
 0x26d   :  { %1516 = vrsqrt.f32 %v654_v23  ;;  %v1983_v49 = vadd.f32 %v1919_v25, %v705_v28  ;;  %v677_v50 = vmul.f32 %v1509_v44, %v1877_v36 }
 0x26e   :  { %835 = vadd.xlane.f32.xlu1 %v1979_v22  ;;  %v1292_v30 = vpack.c.bf16 %v1979_v22, %v1959_v21  ;;  %v698_v45 = vmul.f32 %v1913_v18, %v676_v29 }
 0x26f   :  { %v1511_v31 = vpop.eup %1510  ;;  %v699_v54 = vmul.f32 %v1913_v18, %v677_v50  ;;  %837 = vadd.xlane.f32.xlu0 %v1983_v49 }
 0x270   :  { %v1513_v56 = vpop.eup %1512  ;;  %1348 = vst [vmem:[#allocation8 + $0x28] sm:$0xff] %v1292_v30   ;;  %v1993_v37 = vadd.f32 %v1919_v25, %v698_v45  ;;  %v684_v47 = vmul.f32 %v1511_v31, %v1887_v48 }
 0x271   :  { %v1997_v36 = vadd.f32 %v1919_v25, %v699_v54  ;;  %v685_v32 = vmul.f32 %v1513_v56, %v1891_v51 }
 0x272   :  { %823 = vadd.xlane.f32.xlu1 %v1993_v37  ;;  %v1277_v57 = vpack.c.bf16 %v1993_v37, %v1969_v42  ;;  %v706_v58 = vmul.f32 %v1913_v18, %v684_v47 }
 0x273   :  { %v1515_v46 = vpop.eup %1514  ;;  %v707_v59 = vmul.f32 %v1913_v18, %v685_v32  ;;  %825 = vadd.xlane.f32.xlu0 %v1997_v36 }
 0x274   :  { %1345 = vst [vmem:[#allocation8 + $0x10] sm:$0xff] %v1277_v57   ;;  %v2007_v48 = vadd.f32 %v1919_v25, %v706_v58  ;;  %v678_v60 = vmul.f32 %v1515_v46, %v1900_v53 }
 0x275   :  { %v2011_v51 = vadd.f32 %v1919_v25, %v707_v59 }
 0x276   :  { %839 = vadd.xlane.f32.xlu1 %v2007_v48  ;;  %v1297_v1 = vpack.c.bf16 %v2007_v48, %v1983_v49  ;;  %v700_v61 = vmul.f32 %v1913_v18, %v678_v60 }
 0x277   :  { %v1517_v3 = vpop.eup %1516  ;;  %841 = vadd.xlane.f32.xlu0 %v2011_v51 }
 0x278   :  { %1349 = vst [vmem:[#allocation8 + $0x30] sm:$0xff] %v1297_v1   ;;  %v2019_v5 = vadd.f32 %v1919_v25, %v700_v61  ;;  %v686_v6 = vmul.f32 %v1517_v3, %v1906_v55 }
 0x27a   :  { %827 = vadd.xlane.f32.xlu1 %v2019_v5  ;;  %v1282_v53 = vpack.c.bf16 %v2019_v5, %v1997_v36  ;;  %v708_v9 = vmul.f32 %v1913_v18, %v686_v6 }
 0x27c   :  { %1346 = vst [vmem:[#allocation8 + $0x18] sm:$0xff] %v1282_v53   ;;  %v2027_v62 = vadd.f32 %v1919_v25, %v708_v9 }
 0x27e   :  { %843 = vadd.xlane.f32.xlu1 %v2027_v62  ;;  %v1302_v63 = vpack.c.bf16 %v2027_v62, %v2011_v51 }
 0x280   :  { %1350 = vst [vmem:[#allocation8 + $0x38] sm:$0xff] %v1302_v63  }
 0x2e7   :  { %v814_v10 = vpop.xlane.xlu0 %813 }
 0x2e8   :  { %v845_v2 = vmul.f32 0.125, %v814_v10 }
 0x2ea   :  { %v861_v55 = vsub.f32 %v1923_v38, %v845_v2 }
 0x2eb   :  { %v830_v13 = vpop.xlane.xlu0 %829 }
 0x2ec   :  { %v853_v17 = vmul.f32 0.125, %v830_v13  ;;  %v2035_v20 = vsel %vm542_vm0, %v861_v55, 0.0 }
 0x2ed   :  { %v893_v18 = vmul.f32 %v2035_v20, %v2035_v20 }
 0x2ee   :  { %v869_v25 = vsub.f32 %v1929_v52, %v853_v17 }
 0x2ef   :  { %v816_v7 = vpop.xlane.xlu1 %815  ;;  %909 = vadd.xlane.f32.xlu0 %v893_v18 }
 0x2f0   :  { %v846_v12 = vmul.f32 0.125, %v816_v7  ;;  %v818_v8 = vpop.xlane.xlu0 %817  ;;  %v2042_v24 = vsel %vm542_vm0, %v869_v25, 0.0 }
 0x2f1   :  { %v847_v38 = vmul.f32 0.125, %v818_v8  ;;  %v901_v26 = vmul.f32 %v2042_v24, %v2042_v24 }
 0x2f2   :  { %v862_v27 = vsub.f32 %v1937_v0, %v846_v12 }
 0x2f3   :  { %v863_v33 = vsub.f32 %v1941_v4, %v847_v38  ;;  %v832_v11 = vpop.xlane.xlu1 %831  ;;  %925 = vadd.xlane.f32.xlu0 %v901_v26 }
 0x2f4   :  { %v854_v19 = vmul.f32 0.125, %v832_v11  ;;  %v2050_v52 = vsel %vm542_vm0, %v862_v27, 0.0  ;;  %v834_v15 = vpop.xlane.xlu0 %833 }
 0x2f5   :  { %v894_v35 = vmul.f32 %v2050_v52, %v2050_v52  ;;  %v2056_v39 = vsel %vm542_vm0, %v863_v33, 0.0  ;;  %v855_v0 = vmul.f32 0.125, %v834_v15 }
 0x2f6   :  { %v870_v40 = vsub.f32 %v1950_v16, %v854_v19  ;;  %v895_v4 = vmul.f32 %v2056_v39, %v2056_v39 }
 0x2f7   :  { %911 = vadd.xlane.f32.xlu1 %v894_v35  ;;  %v820_v41 = vpop.xlane.xlu1 %819  ;;  %v871_v43 = vsub.f32 %v1959_v21, %v855_v0 }
 0x2f8   :  { %v848_v23 = vmul.f32 0.125, %v820_v41  ;;  %913 = vadd.xlane.f32.xlu0 %v895_v4  ;;  %v2064_v28 = vsel %vm542_vm0, %v870_v40, 0.0  ;;  %v822_v44 = vpop.xlane.xlu0 %821 }
 0x2f9   :  { %v902_v29 = vmul.f32 %v2064_v28, %v2064_v28  ;;  %v849_v50 = vmul.f32 0.125, %v822_v44  ;;  %v2071_v30 = vsel %vm542_vm0, %v871_v43, 0.0 }
 0x2fa   :  { %v864_v16 = vsub.f32 %v1965_v14, %v848_v23  ;;  %v903_v21 = vmul.f32 %v2071_v30, %v2071_v30 }
 0x2fb   :  { %927 = vadd.xlane.f32.xlu1 %v902_v29  ;;  %v836_v45 = vpop.xlane.xlu1 %835  ;;  %v865_v31 = vsub.f32 %v1969_v42, %v849_v50 }
 0x2fc   :  { %v856_v54 = vmul.f32 0.125, %v836_v45  ;;  %v2078_v56 = vsel %vm542_vm0, %v864_v16, 0.0  ;;  %929 = vadd.xlane.f32.xlu0 %v903_v21  ;;  %v838_v47 = vpop.xlane.xlu0 %837 }
 0x2fd   :  { %v896_v14 = vmul.f32 %v2078_v56, %v2078_v56  ;;  %v857_v57 = vmul.f32 0.125, %v838_v47  ;;  %v2085_v58 = vsel %vm542_vm0, %v865_v31, 0.0 }
 0x2fe   :  { %v872_v32 = vsub.f32 %v1979_v22, %v856_v54  ;;  %v897_v42 = vmul.f32 %v2085_v58, %v2085_v58 }
 0x2ff   :  { %915 = vadd.xlane.f32.xlu1 %v896_v14  ;;  %v824_v46 = vpop.xlane.xlu1 %823  ;;  %v873_v59 = vsub.f32 %v1983_v49, %v857_v57 }
 0x300   :  { %v850_v60 = vmul.f32 0.125, %v824_v46  ;;  %v2092_v1 = vsel %vm542_vm0, %v872_v32, 0.0  ;;  %917 = vadd.xlane.f32.xlu0 %v897_v42  ;;  %v826_v61 = vpop.xlane.xlu0 %825 }
 0x301   :  { %v904_v22 = vmul.f32 %v2092_v1, %v2092_v1  ;;  %v851_v6 = vmul.f32 0.125, %v826_v61  ;;  %v2099_v53 = vsel %vm542_vm0, %v873_v59, 0.0 }
 0x302   :  { %v866_v3 = vsub.f32 %v1993_v37, %v850_v60  ;;  %v905_v49 = vmul.f32 %v2099_v53, %v2099_v53 }
 0x303   :  { %931 = vadd.xlane.f32.xlu1 %v904_v22  ;;  %v840_v9 = vpop.xlane.xlu1 %839  ;;  %v867_v63 = vsub.f32 %v1997_v36, %v851_v6 }
 0x304   :  { %v858_v10 = vmul.f32 0.125, %v840_v9  ;;  %v2106_v2 = vsel %vm542_vm0, %v866_v3, 0.0  ;;  %933 = vadd.xlane.f32.xlu0 %v905_v49  ;;  %v842_v55 = vpop.xlane.xlu0 %841 }
 0x305   :  { %v898_v37 = vmul.f32 %v2106_v2, %v2106_v2  ;;  %v859_v17 = vmul.f32 0.125, %v842_v55  ;;  %v2113_v18 = vsel %vm542_vm0, %v867_v63, 0.0 }
 0x306   :  { %v874_v13 = vsub.f32 %v2007_v48, %v858_v10  ;;  %v899_v36 = vmul.f32 %v2113_v18, %v2113_v18 }
 0x307   :  { %919 = vadd.xlane.f32.xlu1 %v898_v37  ;;  %v828_v25 = vpop.xlane.xlu1 %827  ;;  %v875_v7 = vsub.f32 %v2011_v51, %v859_v17 }
 0x308   :  { %v852_v12 = vmul.f32 0.125, %v828_v25  ;;  %v2120_v8 = vsel %vm542_vm0, %v874_v13, 0.0  ;;  %921 = vadd.xlane.f32.xlu0 %v899_v36 }
 0x309   :  { %v906_v48 = vmul.f32 %v2120_v8, %v2120_v8  ;;  %v2127_v26 = vsel %vm542_vm0, %v875_v7, 0.0 }
 0x30a   :  { %v868_v38 = vsub.f32 %v2019_v5, %v852_v12  ;;  %v907_v51 = vmul.f32 %v2127_v26, %v2127_v26 }
 0x30b   :  { %935 = vadd.xlane.f32.xlu1 %v906_v48  ;;  %v844_v27 = vpop.xlane.xlu1 %843 }
 0x30c   :  { %v860_v33 = vmul.f32 0.125, %v844_v27  ;;  %v2133_v11 = vsel %vm542_vm0, %v868_v38, 0.0  ;;  %937 = vadd.xlane.f32.xlu0 %v907_v51 }
 0x30d   :  { %v900_v19 = vmul.f32 %v2133_v11, %v2133_v11 }
 0x30e   :  { %v876_v5 = vsub.f32 %v2027_v62, %v860_v33 }
 0x30f   :  { %923 = vadd.xlane.f32.xlu1 %v900_v19 }
 0x310   :  { %v2140_v15 = vsel %vm542_vm0, %v876_v5, 0.0 }
 0x311   :  { %v908_v35 = vmul.f32 %v2140_v15, %v2140_v15 }
 0x313   :  { %939 = vadd.xlane.f32.xlu1 %v908_v35 }
 0x314   :  { %1605 = shalt.err (!%p1602_p6)
}
 0x315   :  { %s1606_s17 = scalar_lea.hbm %s2239_s7, 1024 }
 0x316   :  { %p1607_p7 = scmp.ne.s32.totalorder %s2239_s7, %s1606_s17  ;;  %p1610_p8 = scmp.lt.u32.totalorder %s1606_s17, %s2239_s7 }
 0x318   :  { %p1612_p9 = pnand %p1610_p8, %p1607_p7 }
 0x31a   :  { %1615 = shalt.err (!%p1612_p9)
}
 0x31b   :  { %1140 = dma.vmem_to_hbm [thread:$0]  %s1135_s4, 1024, %s2239_s7, [#allocation5], %s1650_s0, %s1650_s0, %s1651_s28  }
 0x31c   :  { %v2163_v6 = vld [vmem:[%s2237_s5] ss:$0 sm:$0xff]  ;;  %s1653_s5 = smov [#allocation9]  }
 0x31d   :  { %v2171_v7 = vld [vmem:[%s2238_s6] ss:$0 sm:$0xff]  ;;  %s1146_s6 = sshll.u32 %s1653_s5, 4  ;;  %s1147_s6 = int_to_ptr.vmem [resolvable:$true] %s1146_s6 }
 0x31e   :  { %s1616_s27 = scalar_lea.vmem %s1147_s6, 1024  ;;  %p1621_p11 = scmp.lt.s32.totalorder %s1147_s6, %s1147_s6 }
 0x31f   :  { %p1617_p10 = scmp.ne.s32.totalorder %s1147_s6, %s1616_s27  ;;  %p1622_p12 = scmp.lt.s32.totalorder %s1616_s27, %s1616_s27 }
 0x321   :  { %p1623_p13 = por %p1622_p12, %p1621_p11 }
 0x323   :  { %p1624_p0 = pnand %p1623_p13, %p1617_p10 }
 0x37c   :  { %v910_v34 = vpop.xlane.xlu0 %909 }
 0x37d   :  { %v941_v62 = vmul.f32 0.125, %v910_v34 }
 0x37f   :  { %v957_v40 = vadd.f32 1e-05, %v941_v62 }
 0x380   :  { %v926_v0 = vpop.xlane.xlu0 %925 }
 0x381   :  { %v949_v4 = vmul.f32 0.125, %v926_v0  ;;  %1518 = vrsqrt.f32 %v957_v40 }
 0x383   :  { %v965_v41 = vadd.f32 1e-05, %v949_v4 }
 0x384   :  { %v912_v43 = vpop.xlane.xlu1 %911 }
 0x385   :  { %v942_v23 = vmul.f32 0.125, %v912_v43  ;;  %v914_v44 = vpop.xlane.xlu0 %913  ;;  %1520 = vrsqrt.f32 %v965_v41 }
 0x386   :  { %v943_v29 = vmul.f32 0.125, %v914_v44 }
 0x387   :  { %v958_v16 = vadd.f32 1e-05, %v942_v23 }
 0x388   :  { %v959_v50 = vadd.f32 1e-05, %v943_v29  ;;  %v928_v45 = vpop.xlane.xlu1 %927 }
 0x389   :  { %1522 = vrsqrt.f32 %v958_v16  ;;  %v950_v21 = vmul.f32 0.125, %v928_v45  ;;  %v930_v31 = vpop.xlane.xlu0 %929 }
 0x38a   :  { %1524 = vrsqrt.f32 %v959_v50  ;;  %v951_v47 = vmul.f32 0.125, %v930_v31 }
 0x38b   :  { %v966_v54 = vadd.f32 1e-05, %v950_v21  ;;  %v1519_v32 = vpop.eup %1518 }
 0x38c   :  { %v916_v14 = vpop.xlane.xlu1 %915  ;;  %v967_v57 = vadd.f32 1e-05, %v951_v47  ;;  %v989_v61 = vmul.f32 %v1519_v32, %v2035_v20 }
 0x38d   :  { %1526 = vrsqrt.f32 %v966_v54  ;;  %v944_v46 = vmul.f32 0.125, %v916_v14  ;;  %v918_v42 = vpop.xlane.xlu0 %917 }
 0x38e   :  { %1528 = vrsqrt.f32 %v967_v57  ;;  %v945_v60 = vmul.f32 0.125, %v918_v42  ;;  %v1011_v17 = vmul.f32 %v2163_v6, %v989_v61 }
 0x38f   :  { %v960_v59 = vadd.f32 1e-05, %v944_v46  ;;  %v1521_v3 = vpop.eup %1520 }
 0x390   :  { %v932_v22 = vpop.xlane.xlu1 %931  ;;  %v961_v9 = vadd.f32 1e-05, %v945_v60  ;;  %v997_v20 = vmul.f32 %v1521_v3, %v2042_v24 }
 0x391   :  { %1530 = vrsqrt.f32 %v960_v59  ;;  %v952_v49 = vmul.f32 0.125, %v932_v22  ;;  %v934_v63 = vpop.xlane.xlu0 %933 }
 0x392   :  { %1532 = vrsqrt.f32 %v961_v9  ;;  %v953_v37 = vmul.f32 0.125, %v934_v63  ;;  %v1019_v5 = vmul.f32 %v2163_v6, %v997_v20 }
 0x393   :  { %v1523_v10 = vpop.eup %1522  ;;  %v968_v55 = vadd.f32 1e-05, %v952_v49 }
 0x394   :  { %v1525_v13 = vpop.eup %1524  ;;  %v990_v25 = vmul.f32 %v1523_v10, %v2050_v52  ;;  %v920_v36 = vpop.xlane.xlu1 %919  ;;  %v969_v12 = vadd.f32 1e-05, %v953_v37  ;;  %v1033_v52 = vadd.f32 %v2171_v7, %v1011_v17  ;;  %v1041_v50 = vadd.f32 %v2171_v7, %v1019_v5 }
 0x395   :  { %1534 = vrsqrt.f32 %v968_v55  ;;  %v946_v48 = vmul.f32 0.125, %v920_v36  ;;  %v922_v27 = vpop.xlane.xlu0 %921  ;;  %v991_v33 = vmul.f32 %v1525_v13, %v2056_v39 }
 0x396   :  { %v1012_v38 = vmul.f32 %v2163_v6, %v990_v25  ;;  %1536 = vrsqrt.f32 %v969_v12  ;;  %v947_v24 = vmul.f32 0.125, %v922_v27 }
 0x397   :  { %v1527_v51 = vpop.eup %1526  ;;  %v962_v19 = vadd.f32 1e-05, %v946_v48  ;;  %v1013_v44 = vmul.f32 %v2163_v6, %v991_v33 }
 0x398   :  { %v1034_v35 = vadd.f32 %v2171_v7, %v1012_v38  ;;  %v998_v34 = vmul.f32 %v1527_v51, %v2064_v28  ;;  %v936_v62 = vpop.xlane.xlu1 %935  ;;  %v1529_v40 = vpop.eup %1528  ;;  %v963_v0 = vadd.f32 1e-05, %v947_v24 }
 0x399   :  { %1538 = vrsqrt.f32 %v962_v19  ;;  %v954_v4 = vmul.f32 0.125, %v936_v62  ;;  %v938_v39 = vpop.xlane.xlu0 %937  ;;  %v999_v45 = vmul.f32 %v1529_v40, %v2071_v30  ;;  %v1035_v42 = vadd.f32 %v2171_v7, %v1013_v44 }
 0x39a   :  { %v1307_v41 = vpack.c.bf16 %v1034_v35, %v1033_v52  ;;  %v1020_v43 = vmul.f32 %v2163_v6, %v998_v34  ;;  %1540 = vrsqrt.f32 %v963_v0  ;;  %v955_v16 = vmul.f32 0.125, %v938_v39 }
 0x39b   :  { %v1531_v23 = vpop.eup %1530  ;;  %v970_v29 = vadd.f32 1e-05, %v954_v4  ;;  %v1021_v60 = vmul.f32 %v2163_v6, %v999_v45 }
 0x39c   :  { %1308 = vst [vmem:[#allocation9] sm:$0xff] %v1307_v41   ;;  %v1042_v28 = vadd.f32 %v2171_v7, %v1020_v43  ;;  %v992_v21 = vmul.f32 %v1531_v23, %v2078_v56  ;;  %v924_v31 = vpop.xlane.xlu1 %923  ;;  %v1533_v54 = vpop.eup %1532  ;;  %v971_v47 = vadd.f32 1e-05, %v955_v16 }
 0x39d   :  { %1542 = vrsqrt.f32 %v970_v29  ;;  %v948_v14 = vmul.f32 0.125, %v924_v31  ;;  %v993_v56 = vmul.f32 %v1533_v54, %v2085_v58  ;;  %v1043_v13 = vadd.f32 %v2171_v7, %v1021_v60 }
 0x39e   :  { %v1327_v32 = vpack.c.bf16 %v1042_v28, %v1041_v50  ;;  %v1014_v57 = vmul.f32 %v2163_v6, %v992_v21  ;;  %1544 = vrsqrt.f32 %v971_v47 }
 0x39f   :  { %v1535_v46 = vpop.eup %1534  ;;  %v964_v59 = vadd.f32 1e-05, %v948_v14  ;;  %v1015_v17 = vmul.f32 %v2163_v6, %v993_v56 }
 0x3a0   :  { %1354 = vst [vmem:[#allocation9 + $0x20] sm:$0xff] %v1327_v32   ;;  %v1036_v30 = vadd.f32 %v2171_v7, %v1014_v57  ;;  %v1000_v61 = vmul.f32 %v1535_v46, %v2092_v1  ;;  %v940_v22 = vpop.xlane.xlu1 %939  ;;  %v1537_v3 = vpop.eup %1536 }
 0x3a1   :  { %1546 = vrsqrt.f32 %v964_v59  ;;  %v956_v9 = vmul.f32 0.125, %v940_v22  ;;  %v1001_v55 = vmul.f32 %v1537_v3, %v2099_v53  ;;  %v1037_v53 = vadd.f32 %v2171_v7, %v1015_v17 }
 0x3a2   :  { %v1312_v49 = vpack.c.bf16 %v1036_v30, %v1035_v42  ;;  %v1022_v63 = vmul.f32 %v2163_v6, %v1000_v61 }
 0x3a3   :  { %v1539_v10 = vpop.eup %1538  ;;  %v972_v37 = vadd.f32 1e-05, %v956_v9  ;;  %v1023_v48 = vmul.f32 %v2163_v6, %v1001_v55 }
 0x3a4   :  { %1351 = vst [vmem:[#allocation9 + $0x8] sm:$0xff] %v1312_v49   ;;  %v1044_v58 = vadd.f32 %v2171_v7, %v1022_v63  ;;  %v994_v1 = vmul.f32 %v1539_v10, %v2106_v2  ;;  %v1541_v20 = vpop.eup %1540 }
 0x3a5   :  { %1548 = vrsqrt.f32 %v972_v37  ;;  %v995_v27 = vmul.f32 %v1541_v20, %v2113_v18  ;;  %v1045_v52 = vadd.f32 %v2171_v7, %v1023_v48 }
 0x3a6   :  { %v1332_v25 = vpack.c.bf16 %v1044_v58, %v1043_v13  ;;  %v1016_v36 = vmul.f32 %v2163_v6, %v994_v1 }
 0x3a7   :  { %v1543_v12 = vpop.eup %1542  ;;  %v1017_v5 = vmul.f32 %v2163_v6, %v995_v27 }
 0x3a8   :  { %1355 = vst [vmem:[#allocation9 + $0x28] sm:$0xff] %v1332_v25   ;;  %v1038_v38 = vadd.f32 %v2171_v7, %v1016_v36  ;;  %v1002_v51 = vmul.f32 %v1543_v12, %v2120_v8  ;;  %v1545_v33 = vpop.eup %1544 }
 0x3a9   :  { %v1003_v34 = vmul.f32 %v1545_v33, %v2127_v26  ;;  %v1039_v0 = vadd.f32 %v2171_v7, %v1017_v5 }
 0x3aa   :  { %v1317_v19 = vpack.c.bf16 %v1038_v38, %v1037_v53  ;;  %v1024_v2 = vmul.f32 %v2163_v6, %v1002_v51 }
 0x3ab   :  { %v1547_v24 = vpop.eup %1546  ;;  %v1025_v4 = vmul.f32 %v2163_v6, %v1003_v34 }
 0x3ac   :  { %1352 = vst [vmem:[#allocation9 + $0x10] sm:$0xff] %v1317_v19   ;;  %v1046_v35 = vadd.f32 %v2171_v7, %v1024_v2  ;;  %v996_v62 = vmul.f32 %v1547_v24, %v2133_v11 }
 0x3ad   :  { %v1047_v26 = vadd.f32 %v2171_v7, %v1025_v4 }
 0x3ae   :  { %v1337_v40 = vpack.c.bf16 %v1046_v35, %v1045_v52  ;;  %v1018_v18 = vmul.f32 %v2163_v6, %v996_v62 }
 0x3af   :  { %v1549_v8 = vpop.eup %1548 }
 0x3b0   :  { %1356 = vst [vmem:[#allocation9 + $0x30] sm:$0xff] %v1337_v40   ;;  %v1040_v41 = vadd.f32 %v2171_v7, %v1018_v18  ;;  %v1004_v43 = vmul.f32 %v1549_v8, %v2140_v15 }
 0x3b2   :  { %v1322_v39 = vpack.c.bf16 %v1040_v41, %v1039_v0  ;;  %v1026_v23 = vmul.f32 %v2163_v6, %v1004_v43 }
 0x3b4   :  { %1353 = vst [vmem:[#allocation9 + $0x18] sm:$0xff] %v1322_v39   ;;  %v1048_v11 = vadd.f32 %v2171_v7, %v1026_v23 }
 0x3b6   :  { %v1342_v44 = vpack.c.bf16 %v1048_v11, %v1047_v26 }
 0x3b8   :  { %1357 = vst [vmem:[#allocation9 + $0x38] sm:$0xff] %v1342_v44  }
 0x3b9   :  { %1627 = shalt.err (!%p1624_p0)
}
 0x3ba   :  { %s1628_s9 = scalar_lea.hbm %s2240_s8, 1024 }
 0x3bb   :  { %p1629_p1 = scmp.ne.s32.totalorder %s2240_s8, %s1628_s9  ;;  %p1632_p2 = scmp.lt.u32.totalorder %s1628_s9, %s2240_s8 }
 0x3bd   :  { %p1634_p3 = pnand %p1632_p2, %p1629_p1 }
 0x3bf   :  { %1637 = shalt.err (!%p1634_p3)
}
 0x3c0   :  { %1152 = dma.vmem_to_hbm [thread:$0]  %s1147_s6, 1024, %s2240_s8, [#allocation10], %s1650_s0, %s1650_s0, %s1651_s28  }
 0x3c1   :  { %1642 = dma.done.wait [#allocation5], 1024  }
 0x3c2   :  { %1643 = vsyncadd [#allocation5], 4294966272 }
 0x3c3   :  { %1644 = dma.done.wait [#allocation10], 1024  }
 0x3c4   :  { %1645 = vsyncadd [#allocation10], 4294966272 }
 0x3c5   :  { %1159 = vsyncpa [#allocation4], 1 }
 0x3c6   :  { %1160 = vsyncpa [#allocation7], 1 }
 0x3c7   :  { %1161 = vsyncpa [#allocation5], 1 }
 0x3c8   :  { %1162 = vsyncpa [#allocation10], 1 }

</bundles_post_ra>
